<compile_context>
chip_gen: v7x
topology: tpu7x:2x2x1
jax: 0.10.0
libtpu: 0.0.40
codegen_flags: <defaults>
</compile_context>

<pallas_src>
import functools

import jax
import jax.numpy as jnp
from jax import lax
from jax.experimental import pallas as pl
from jax.experimental.pallas import tpu as pltpu


def _round_up(v, m):
    return (v + m - 1) // m * m


# --------------------------------------------------------------------------
# Stage 1: per-block (G graphs) SAGE pre-BN:
#   relu(l2norm((adj @ x) @ [We|Wa] + [be|ba]))
# plus per-graph partial BatchNorm statistics (sum, sum of squares per node).
# --------------------------------------------------------------------------
def _sage_pre_bn_kernel(x_ref, adj_ref, w_ref, b_ref,
                        he_ref, ha_ref, stats_ref, *, hpad, matmul_dtype):
    f32 = jnp.float32
    md = matmul_dtype
    G, N, _ = x_ref.shape

    w = w_ref[...].astype(md)                                     # (F, Hp+Cp)
    b = b_ref[...]                                                 # (1, Hp+Cp) f32

    # Per-graph neighbourhood aggregation (adj is block-diagonal over graphs),
    # then a single fused lane-wide weight matmul over all G*N rows.
    hn = [jnp.dot(adj_ref[g].astype(md), x_ref[g].astype(md),
                  preferred_element_type=f32) for g in range(G)]
    h_neigh = hn[0] if G == 1 else jnp.concatenate(hn, axis=0)     # (G*N, F) f32
    h_cat = jnp.dot(h_neigh.astype(md), w,
                    preferred_element_type=f32) + b                # (G*N, Hp+Cp)

    def _l2norm_relu(h):
        # F.normalize(h, p=2, dim=-1, eps=1e-12) then relu; rsqrt -> EUP slot.
        ssq = jnp.sum(h * h, axis=-1, keepdims=True)
        return jnp.maximum(h * lax.rsqrt(jnp.maximum(ssq, 1e-24)), 0.0)

    # hpad is a multiple of 128 -> lane-tile-aligned split (no relayout copies).
    h_e = _l2norm_relu(h_cat[:, :hpad])                            # (G*N, Hp)
    h_a = _l2norm_relu(h_cat[:, hpad:])                            # (G*N, Cp)

    # Partial BN statistics in f32 (computed BEFORE the possibly-bf16 store).
    # Zero-padded columns contribute nothing to the sums.
    stats_ref[:, :, 0:1] = jnp.sum(h_e, axis=-1, keepdims=True).reshape(G, N, 1)
    stats_ref[:, :, 1:2] = jnp.sum(h_e * h_e, axis=-1, keepdims=True).reshape(G, N, 1)
    stats_ref[:, :, 2:3] = jnp.sum(h_a, axis=-1, keepdims=True).reshape(G, N, 1)
    stats_ref[:, :, 3:4] = jnp.sum(h_a * h_a, axis=-1, keepdims=True).reshape(G, N, 1)

    he_ref[...] = h_e.reshape(he_ref.shape).astype(he_ref.dtype)
    ha_ref[...] = h_a.reshape(ha_ref.shape).astype(ha_ref.dtype)


# --------------------------------------------------------------------------
# Stage 2: per-block (G graphs) BN + masked softmax + pooling matmuls.
# --------------------------------------------------------------------------
def _pool_kernel(he_ref, ha_ref, adj_ref, bn_ref,
                 xnext_ref, anext_ref, *, n_clusters, matmul_dtype, approx_recip):
    f32 = jnp.float32
    md = matmul_dtype
    G, N, cpad = ha_ref.shape

    bn = bn_ref[...]                                               # (N, 4) f32
    mean_e, inv_e = bn[:, 0:1], bn[:, 1:2]
    mean_a, inv_a = bn[:, 2:3], bn[:, 3:4]

    if n_clusters < cpad:
        col = lax.broadcasted_iota(jnp.int32, (1, cpad), 1)
        keep = col < n_clusters
    else:
        keep = None

    for g in range(G):
        z = (he_ref[g].astype(f32) - mean_e) * inv_e               # BN(embed)   (N, Hp)
        s0 = (ha_ref[g].astype(f32) - mean_a) * inv_a              # BN(assign)  (N, Cp)
        if keep is not None:                                       # mask padded clusters
            s0 = jnp.where(keep, s0, jnp.float32(-1e30))

        # Softmax over clusters (EUP exp + EUP reciprocal, no VALU divide).
        s0 = s0 - jnp.max(s0, axis=-1, keepdims=True)
        e = jnp.exp(s0)
        s = e * pl.reciprocal(jnp.sum(e, axis=-1, keepdims=True), approx=approx_recip)

        s_m = s.astype(md)
        s_t = jnp.transpose(s).astype(md)                          # one shared transpose (Cp, N)
        adj = adj_ref[g].astype(md)                                # (N, N)

        # xnext = s^T @ z
        xnext_ref[g] = jnp.dot(s_t, z.astype(md),
                               preferred_element_type=f32).astype(xnext_ref.dtype)
        # anext = s^T @ adj @ s
        t = jnp.dot(s_t, adj, preferred_element_type=f32)          # (Cp, N)
        anext_ref[g] = jnp.dot(t.astype(md), s_m,
                               preferred_element_type=f32).astype(anext_ref.dtype)


def _compiler_params(block_bytes, resident_bytes):
    # 2 buffers x actual per-block bytes + resident blocks + headroom, capped
    # well under v7x's 64 MiB per-TC VMEM.  Batch axis is 'parallel' (megacore).
    need = 2 * (block_bytes + resident_bytes) + (4 << 20)
    limit = int(min(48 << 20, max(16 << 20, need)))
    return pltpu.CompilerParams(dimension_semantics=("parallel",),
                                vmem_limit_bytes=limit)


def _graphs_per_step(batch, per_graph_bytes, budget=8 << 20):
    g = max(1, min(batch, budget // max(per_graph_bytes, 1)))
    while batch % g:
        g -= 1
    return int(g)


@functools.partial(jax.jit,
                   static_argnames=("matmul_dtype", "adj_dtype", "approx_recip"))
def batched_diffpool(x, adj, w_embed, b_embed, w_assign, b_assign,
                     matmul_dtype=jnp.bfloat16, adj_dtype=jnp.bfloat16,
                     approx_recip=False):
    f32 = jnp.float32
    B, N, F = x.shape
    H = w_embed.shape[1]
    C = w_assign.shape[1]
    Hp = _round_up(H, 128)
    Cp = _round_up(C, 128)
    hc = Hp + Cp

    h_dtype = jnp.dtype(matmul_dtype)            # inter-stage h_e/h_a storage
    ih = h_dtype.itemsize
    ia = jnp.dtype(adj_dtype).itemsize

    x = x.astype(f32)
    # bf16 is exact for {0,1,2}-valued adjacency; halves the dominant HBM stream.
    adj = adj.astype(adj_dtype)

    # Zero-padded fused weights/bias: embed at cols [0,H), assign at [Hp,Hp+C).
    w_cat = jnp.zeros((F, hc), f32)
    w_cat = w_cat.at[:, :H].set(w_embed.astype(f32))
    w_cat = w_cat.at[:, Hp:Hp + C].set(w_assign.astype(f32))
    b_cat = jnp.zeros((1, hc), f32)
    b_cat = b_cat.at[:, :H].set(b_embed.astype(f32).reshape(1, H))
    b_cat = b_cat.at[:, Hp:Hp + C].set(b_assign.astype(f32).reshape(1, C))

    # ---- choose graphs-per-grid-step (batch blocking) ----
    s1_graph = N * N * ia + N * F * 4 + N * hc * ih + N * 4 * 4
    s2_graph = N * N * ia + N * hc * ih + Cp * Hp * 4 + Cp * Cp * 4
    G = _graphs_per_step(B, max(s1_graph, s2_graph))
    grid = (B // G,)

    # ---- stage 1: per-graph SAGE (pre-BN) + partial BN statistics ----
    h_e, h_a, stats = pl.pallas_call(
        functools.partial(_sage_pre_bn_kernel, hpad=Hp, matmul_dtype=matmul_dtype),
        grid=grid,
        in_specs=[
            pl.BlockSpec((G, N, F), lambda b: (b, 0, 0)),          # x
            pl.BlockSpec((G, N, N), lambda b: (b, 0, 0)),          # adj (bf16)
            pl.BlockSpec((F, hc), lambda b: (0, 0)),               # fused weights
            pl.BlockSpec((1, hc), lambda b: (0, 0)),               # fused bias
        ],
        out_specs=(
            pl.BlockSpec((G, N, Hp), lambda b: (b, 0, 0)),
            pl.BlockSpec((G, N, Cp), lambda b: (b, 0, 0)),
            pl.BlockSpec((G, N, 4), lambda b: (b, 0, 0)),
        ),
        out_shape=(
            jax.ShapeDtypeStruct((B, N, Hp), h_dtype),
            jax.ShapeDtypeStruct((B, N, Cp), h_dtype),
            jax.ShapeDtypeStruct((B, N, 4), f32),
        ),
        compiler_params=_compiler_params(G * s1_graph, (F * hc + hc) * 4),
        cost_estimate=pl.CostEstimate(
            flops=2 * B * (N * N * F + N * F * hc),
            transcendentals=2 * B * N,
            bytes_accessed=B * s1_graph + (F * hc + hc) * 4,
        ),
    )(x, adj, w_cat, b_cat)

    # ---- global BatchNorm1d(N) statistics (training mode, biased variance) ----
    # Tiny cross-batch reduction in plain JAX keeps the kernels batch-tiled.
    # Stats are accumulated in f32; E[x^2]-E[x]^2 is safe for post-relu/l2norm
    # values in [0,1] (use Welford if the value range ever grows).
    eps = 1e-5
    tot = jnp.sum(stats, axis=0)                                   # (N, 4)
    mean_e = tot[:, 0] / (B * H)
    var_e = jnp.maximum(tot[:, 1] / (B * H) - mean_e * mean_e, 0.0)
    mean_a = tot[:, 2] / (B * C)
    var_a = jnp.maximum(tot[:, 3] / (B * C) - mean_a * mean_a, 0.0)
    bn = jnp.stack([mean_e, lax.rsqrt(var_e + eps),
                    mean_a, lax.rsqrt(var_a + eps)], axis=-1)      # (N, 4)

    # ---- stage 2: BN + masked softmax + pooling matmuls ----
    xnext_pad, anext_pad = pl.pallas_call(
        functools.partial(_pool_kernel, n_clusters=C, matmul_dtype=matmul_dtype,
                          approx_recip=approx_recip),
        grid=grid,
        in_specs=[
            pl.BlockSpec((G, N, Hp), lambda b: (b, 0, 0)),         # h_embed
            pl.BlockSpec((G, N, Cp), lambda b: (b, 0, 0)),         # h_assign
            pl.BlockSpec((G, N, N), lambda b: (b, 0, 0)),          # adj (bf16)
            pl.BlockSpec((N, 4), lambda b: (0, 0)),                # BN params
        ],
        out_specs=(
            pl.BlockSpec((G, Cp, Hp), lambda b: (b, 0, 0)),
            pl.BlockSpec((G, Cp, Cp), lambda b: (b, 0, 0)),
        ),
        out_shape=(
            jax.ShapeDtypeStruct((B, Cp, Hp), f32),
            jax.ShapeDtypeStruct((B, Cp, Cp), f32),
        ),
        compiler_params=_compiler_params(G * s2_graph, N * 4 * 4),
        cost_estimate=pl.CostEstimate(
            flops=2 * B * (N * Cp * Hp + N * N * Cp + N * Cp * Cp),
            transcendentals=B * N * (Cp + 1),
            bytes_accessed=B * s2_graph + N * 4 * 4,
        ),
    )(h_e, h_a, adj, bn)

    # Drop the zero/garbage padding rows and columns.
    return xnext_pad[:, :C, :H], anext_pad[:, :C, :C]


def _reference(x, adj, w_embed, b_embed, w_assign, b_assign):
    """Pure-JAX reference mirroring the PyTorch forward (f32)."""
    def sage(w, b):
        h = jnp.einsum('bnm,bmf->bnf', adj, x) @ w + b[None]
        norm = jnp.sqrt(jnp.sum(h * h, axis=-1, keepdims=True))
        h = h / jnp.maximum(norm, 1e-12)
        h = jnp.maximum(h, 0.0)
        mean = jnp.mean(h, axis=(0, 2), keepdims=True)
        var = jnp.mean((h - mean) ** 2, axis=(0, 2), keepdims=True)
        return (h - mean) / jnp.sqrt(var + 1e-5)

    z_l = sage(w_embed, b_embed)
    s_l = jax.nn.softmax(sage(w_assign, b_assign), axis=-1)
    xnext = jnp.einsum('bnc,bnh->bch', s_l, z_l)
    anext = jnp.einsum('bnc,bnm,bmk->bck', s_l, adj, s_l)
    return xnext, anext


def _xavier_uniform(key, shape, gain):
    fan_in, fan_out = shape[0], shape[1]
    bound = gain * jnp.sqrt(6.0 / (fan_in + fan_out))
    return jax.random.uniform(key, shape, jnp.float32, -bound, bound)


if __name__ == "__main__":
    # Small shapes consistent with the module: B graphs, N nodes, nfeat -> nhid,
    # nnext clusters.
    B, N, NFEAT, NHID, NNEXT = 2, 16, 32, 32, 8

    key = jax.random.PRNGKey(0)
    kx, kadj, kwe, kbe, kwa, kba = jax.random.split(key, 6)

    x = jax.random.normal(kx, (B, N, NFEAT), jnp.float32)

    # Symmetric non-negative adjacency with self loops (values in {0,1,2}).
    a_raw = (jax.random.uniform(kadj, (B, N, N)) > 0.7).astype(jnp.float32)
    adj = jnp.clip(a_raw + jnp.swapaxes(a_raw, -1, -2), 0.0, 1.0)
    adj = adj + jnp.eye(N, dtype=jnp.float32)[None]

    relu_gain = jnp.sqrt(2.0)
    # Stored already transposed: (in, out), so kernels compute h @ W (== x @ W.T).
    w_embed = _xavier_uniform(kwe, (NFEAT, NHID), relu_gain)
    w_assign = _xavier_uniform(kwa, (NFEAT, NNEXT), relu_gain)
    bound_e = 1.0 / jnp.sqrt(NFEAT)
    b_embed = jax.random.uniform(kbe, (1, NHID), jnp.float32, -bound_e, bound_e)
    b_assign = jax.random.uniform(kba, (1, NNEXT), jnp.float32, -bound_e, bound_e)

    xnext_gold, anext_gold = _reference(x, adj, w_embed, b_embed, w_assign, b_assign)

    # Precise path: f32 matmul operands + f32 inter-stage intermediates
    # (adj stays bf16 at the HBM boundary, which is exact for {0,1,2} values).
    xnext, anext = batched_diffpool(x, adj, w_embed, b_embed, w_assign, b_assign,
                                    matmul_dtype=jnp.float32)
    jax.block_until_ready((xnext, anext))
    assert xnext.shape == (B, NNEXT, NHID) and anext.shape == (B, NNEXT, NNEXT)
    assert jnp.allclose(xnext, xnext_gold, atol=1e-4, rtol=1e-4)
    assert jnp.allclose(anext, anext_gold, atol=1e-4, rtol=1e-4)

    # Default fast path: bf16 MXU operands, bf16 adj and bf16 inter-stage traffic.
    xnext_b, anext_b = batched_diffpool(x, adj, w_embed, b_embed, w_assign, b_assign)
    jax.block_until_ready((xnext_b, anext_b))

    def _relerr(a, b):
        return float(jnp.linalg.norm(a - b) / (jnp.linalg.norm(b) + 1e-6))

    assert _relerr(xnext_b, xnext_gold) < 5e-2
    assert _relerr(anext_b, anext_gold) < 5e-2

    print("KERNEL_OK")
</pallas_src>

<mosaic_0001>
module attributes {stable_mosaic.version = 11 : i64} {
  func.func @_sage_pre_bn_kernel(%arg0: i32, %arg1: memref<2x16x32xf32, #tpu.memory_space<vmem>>, %arg2: memref<2x16x16xbf16, #tpu.memory_space<vmem>>, %arg3: memref<32x256xf32, #tpu.memory_space<vmem>>, %arg4: memref<1x256xf32, #tpu.memory_space<vmem>>, %arg5: memref<2x16x128xf32, #tpu.memory_space<vmem>>, %arg6: memref<2x16x128xf32, #tpu.memory_space<vmem>>, %arg7: memref<2x16x4xf32, #tpu.memory_space<vmem>>) attributes {dimension_semantics = [#tpu.dimension_semantics<parallel>], iteration_bounds = array<i64: 1>, scalar_prefetch = 0 : i64, scratch_operands = 0 : i64, tpu.core_type = #tpu.core_type<tc>, window_params = [{transform_indices = @transform_0, window_bounds = array<i64: 2, 16, 32>}, {transform_indices = @transform_1, window_bounds = array<i64: 2, 16, 16>}, {pipeline_mode = #tpu.pipeline_mode<synchronous>, transform_indices = @transform_2, window_bounds = array<i64: 32, 256>}, {pipeline_mode = #tpu.pipeline_mode<synchronous>, transform_indices = @transform_3, window_bounds = array<i64: 1, 256>}, {transform_indices = @transform_4, window_bounds = array<i64: 2, 16, 128>}, {transform_indices = @transform_5, window_bounds = array<i64: 2, 16, 128>}, {transform_indices = @transform_6, window_bounds = array<i64: 2, 16, 4>}]} {
    %c0 = arith.constant 0 : index
    %c0_0 = arith.constant 0 : index
    %0 = vector.load %arg3[%c0, %c0_0] : memref<32x256xf32, #tpu.memory_space<vmem>>, vector<32x256xf32>
    %c0_1 = arith.constant 0 : index
    %c0_2 = arith.constant 0 : index
    %1 = vector.load %arg4[%c0_1, %c0_2] : memref<1x256xf32, #tpu.memory_space<vmem>>, vector<1x256xf32>
    %c0_3 = arith.constant 0 : index
    %c0_4 = arith.constant 0 : index
    %c0_5 = arith.constant 0 : index
    %2 = vector.load %arg2[%c0_3, %c0_4, %c0_5] : memref<2x16x16xbf16, #tpu.memory_space<vmem>>, vector<1x16x16xbf16>
    %3 = vector.shape_cast %2 : vector<1x16x16xbf16> to vector<16x16xbf16>
    %4 = arith.extf %3 : vector<16x16xbf16> to vector<16x16xf32>
    %c0_6 = arith.constant 0 : index
    %c0_7 = arith.constant 0 : index
    %c0_8 = arith.constant 0 : index
    %5 = vector.load %arg1[%c0_6, %c0_7, %c0_8] : memref<2x16x32xf32, #tpu.memory_space<vmem>>, vector<1x16x32xf32>
    %6 = vector.shape_cast %5 : vector<1x16x32xf32> to vector<16x32xf32>
    %cst = arith.constant dense<0.000000e+00> : vector<16x32xf32>
    %7 = tpu.matmul %4, %6, %cst {dimension_numbers = #tpu.dot_dimension_numbers<[1], [0], [0], [1], [0, 0, 1, 1], [], []>} : vector<16x16xf32>, vector<16x32xf32>, vector<16x32xf32> -> vector<16x32xf32>
    %c1 = arith.constant 1 : index
    %c0_9 = arith.constant 0 : index
    %c0_10 = arith.constant 0 : index
    %8 = vector.load %arg2[%c1, %c0_9, %c0_10] : memref<2x16x16xbf16, #tpu.memory_space<vmem>>, vector<1x16x16xbf16>
    %9 = vector.shape_cast %8 : vector<1x16x16xbf16> to vector<16x16xbf16>
    %10 = arith.extf %9 : vector<16x16xbf16> to vector<16x16xf32>
    %c1_11 = arith.constant 1 : index
    %c0_12 = arith.constant 0 : index
    %c0_13 = arith.constant 0 : index
    %11 = vector.load %arg1[%c1_11, %c0_12, %c0_13] : memref<2x16x32xf32, #tpu.memory_space<vmem>>, vector<1x16x32xf32>
    %12 = vector.shape_cast %11 : vector<1x16x32xf32> to vector<16x32xf32>
    %cst_14 = arith.constant dense<0.000000e+00> : vector<16x32xf32>
    %13 = tpu.matmul %10, %12, %cst_14 {dimension_numbers = #tpu.dot_dimension_numbers<[1], [0], [0], [1], [0, 0, 1, 1], [], []>} : vector<16x16xf32>, vector<16x32xf32>, vector<16x32xf32> -> vector<16x32xf32>
    %14 = tpu.concatenate %7, %13 in 0 : vector<16x32xf32>, vector<16x32xf32> -> vector<32x32xf32>
    %cst_15 = arith.constant dense<0.000000e+00> : vector<32x256xf32>
    %15 = tpu.matmul %14, %0, %cst_15 {dimension_numbers = #tpu.dot_dimension_numbers<[1], [0], [0], [1], [0, 0, 1, 1], [], []>} : vector<32x32xf32>, vector<32x256xf32>, vector<32x256xf32> -> vector<32x256xf32>
    %16 = vector.broadcast %1 : vector<1x256xf32> to vector<32x256xf32>
    %17 = arith.addf %15, %16 : vector<32x256xf32>
    %18 = vector.extract_strided_slice %17 {offsets = [0, 0], sizes = [32, 128], strides = [1, 1]} : vector<32x256xf32> to vector<32x128xf32>
    %19 = arith.mulf %18, %18 : vector<32x128xf32>
    %cst_16 = arith.constant dense<0.000000e+00> : vector<32xf32>
    %20 = vector.multi_reduction <add>, %19, %cst_16 [1] : vector<32x128xf32> to vector<32xf32>
    %21 = vector.shape_cast %20 : vector<32xf32> to vector<32x1xf32>
    %cst_17 = arith.constant 1.000000e-24 : f32
    %22 = vector.broadcast %cst_17 : f32 to vector<32x1xf32>
    %23 = arith.maximumf %21, %22 : vector<32x1xf32>
    %24 = math.rsqrt %23 : vector<32x1xf32>
    %25 = vector.broadcast %24 : vector<32x1xf32> to vector<32x128xf32>
    %26 = arith.mulf %18, %25 : vector<32x128xf32>
    %cst_18 = arith.constant 0.000000e+00 : f32
    %27 = vector.broadcast %cst_18 : f32 to vector<32x128xf32>
    %28 = arith.maximumf %26, %27 : vector<32x128xf32>
    %29 = vector.extract_strided_slice %17 {offsets = [0, 128], sizes = [32, 128], strides = [1, 1]} : vector<32x256xf32> to vector<32x128xf32>
    %30 = arith.mulf %29, %29 : vector<32x128xf32>
    %cst_19 = arith.constant dense<0.000000e+00> : vector<32xf32>
    %31 = vector.multi_reduction <add>, %30, %cst_19 [1] : vector<32x128xf32> to vector<32xf32>
    %32 = vector.shape_cast %31 : vector<32xf32> to vector<32x1xf32>
    %cst_20 = arith.constant 1.000000e-24 : f32
    %33 = vector.broadcast %cst_20 : f32 to vector<32x1xf32>
    %34 = arith.maximumf %32, %33 : vector<32x1xf32>
    %35 = math.rsqrt %34 : vector<32x1xf32>
    %36 = vector.broadcast %35 : vector<32x1xf32> to vector<32x128xf32>
    %37 = arith.mulf %29, %36 : vector<32x128xf32>
    %cst_21 = arith.constant 0.000000e+00 : f32
    %38 = vector.broadcast %cst_21 : f32 to vector<32x128xf32>
    %39 = arith.maximumf %37, %38 : vector<32x128xf32>
    %cst_22 = arith.constant dense<0.000000e+00> : vector<32xf32>
    %40 = vector.multi_reduction <add>, %28, %cst_22 [1] : vector<32x128xf32> to vector<32xf32>
    %41 = vector.shape_cast %40 : vector<32xf32> to vector<32x1xf32>
    %42 = vector.shape_cast %41 : vector<32x1xf32> to vector<2x16x1xf32>
    %c0_23 = arith.constant 0 : index
    %c0_24 = arith.constant 0 : index
    %c0_25 = arith.constant 0 : index
    %43 = vector.load %arg7[%c0_23, %c0_24, %c0_25] : memref<2x16x4xf32, #tpu.memory_space<vmem>>, vector<2x16x1xf32>
    tpu.vector_store %arg7[%c0_23, %c0_24, %c0_25], %42 {strides = array<i32>} : memref<2x16x4xf32, #tpu.memory_space<vmem>>, vector<2x16x1xf32>,
    %44 = arith.mulf %28, %28 : vector<32x128xf32>
    %cst_26 = arith.constant dense<0.000000e+00> : vector<32xf32>
    %45 = vector.multi_reduction <add>, %44, %cst_26 [1] : vector<32x128xf32> to vector<32xf32>
    %46 = vector.shape_cast %45 : vector<32xf32> to vector<32x1xf32>
    %47 = vector.shape_cast %46 : vector<32x1xf32> to vector<2x16x1xf32>
    %c0_27 = arith.constant 0 : index
    %c0_28 = arith.constant 0 : index
    %c1_29 = arith.constant 1 : index
    %48 = vector.load %arg7[%c0_27, %c0_28, %c1_29] : memref<2x16x4xf32, #tpu.memory_space<vmem>>, vector<2x16x1xf32>
    tpu.vector_store %arg7[%c0_27, %c0_28, %c1_29], %47 {strides = array<i32>} : memref<2x16x4xf32, #tpu.memory_space<vmem>>, vector<2x16x1xf32>,
    %cst_30 = arith.constant dense<0.000000e+00> : vector<32xf32>
    %49 = vector.multi_reduction <add>, %39, %cst_30 [1] : vector<32x128xf32> to vector<32xf32>
    %50 = vector.shape_cast %49 : vector<32xf32> to vector<32x1xf32>
    %51 = vector.shape_cast %50 : vector<32x1xf32> to vector<2x16x1xf32>
    %c0_31 = arith.constant 0 : index
    %c0_32 = arith.constant 0 : index
    %c2 = arith.constant 2 : index
    %52 = vector.load %arg7[%c0_31, %c0_32, %c2] : memref<2x16x4xf32, #tpu.memory_space<vmem>>, vector<2x16x1xf32>
    tpu.vector_store %arg7[%c0_31, %c0_32, %c2], %51 {strides = array<i32>} : memref<2x16x4xf32, #tpu.memory_space<vmem>>, vector<2x16x1xf32>,
    %53 = arith.mulf %39, %39 : vector<32x128xf32>
    %cst_33 = arith.constant dense<0.000000e+00> : vector<32xf32>
    %54 = vector.multi_reduction <add>, %53, %cst_33 [1] : vector<32x128xf32> to vector<32xf32>
    %55 = vector.shape_cast %54 : vector<32xf32> to vector<32x1xf32>
    %56 = vector.shape_cast %55 : vector<32x1xf32> to vector<2x16x1xf32>
    %c0_34 = arith.constant 0 : index
    %c0_35 = arith.constant 0 : index
    %c3 = arith.constant 3 : index
    %57 = vector.load %arg7[%c0_34, %c0_35, %c3] : memref<2x16x4xf32, #tpu.memory_space<vmem>>, vector<2x16x1xf32>
    tpu.vector_store %arg7[%c0_34, %c0_35, %c3], %56 {strides = array<i32>} : memref<2x16x4xf32, #tpu.memory_space<vmem>>, vector<2x16x1xf32>,
    %58 = vector.shape_cast %28 : vector<32x128xf32> to vector<2x16x128xf32>
    %c0_36 = arith.constant 0 : index
    %c0_37 = arith.constant 0 : index
    %c0_38 = arith.constant 0 : index
    %59 = vector.load %arg5[%c0_36, %c0_37, %c0_38] : memref<2x16x128xf32, #tpu.memory_space<vmem>>, vector<2x16x128xf32>
    tpu.vector_store %arg5[%c0_36, %c0_37, %c0_38], %58 {strides = array<i32>} : memref<2x16x128xf32, #tpu.memory_space<vmem>>, vector<2x16x128xf32>,
    %60 = vector.shape_cast %39 : vector<32x128xf32> to vector<2x16x128xf32>
    %c0_39 = arith.constant 0 : index
    %c0_40 = arith.constant 0 : index
    %c0_41 = arith.constant 0 : index
    %61 = vector.load %arg6[%c0_39, %c0_40, %c0_41] : memref<2x16x128xf32, #tpu.memory_space<vmem>>, vector<2x16x128xf32>
    tpu.vector_store %arg6[%c0_39, %c0_40, %c0_41], %60 {strides = array<i32>} : memref<2x16x128xf32, #tpu.memory_space<vmem>>, vector<2x16x128xf32>,
    return
  }
  func.func @transform_0(%arg0: i32) -> (i32, i32, i32) {
    %c0_i32 = arith.constant 0 : i32
    %c0_i32_0 = arith.constant 0 : i32
    %c0_i32_1 = arith.constant 0 : i32
    return %arg0, %c0_i32, %c0_i32_0 : i32, i32, i32
  }
  func.func @transform_1(%arg0: i32) -> (i32, i32, i32) {
    %c0_i32 = arith.constant 0 : i32
    %c0_i32_0 = arith.constant 0 : i32
    %c0_i32_1 = arith.constant 0 : i32
    return %arg0, %c0_i32, %c0_i32_0 : i32, i32, i32
  }
  func.func @transform_2(%arg0: i32) -> (i32, i32) {
    %c0_i32 = arith.constant 0 : i32
    %c0_i32_0 = arith.constant 0 : i32
    %c0_i32_1 = arith.constant 0 : i32
    return %c0_i32, %c0_i32_0 : i32, i32
  }
  func.func @transform_3(%arg0: i32) -> (i32, i32) {
    %c0_i32 = arith.constant 0 : i32
    %c0_i32_0 = arith.constant 0 : i32
    %c0_i32_1 = arith.constant 0 : i32
    return %c0_i32, %c0_i32_0 : i32, i32
  }
  func.func @transform_4(%arg0: i32) -> (i32, i32, i32) {
    %c0_i32 = arith.constant 0 : i32
    %c0_i32_0 = arith.constant 0 : i32
    %c0_i32_1 = arith.constant 0 : i32
    return %arg0, %c0_i32, %c0_i32_0 : i32, i32, i32
  }
  func.func @transform_5(%arg0: i32) -> (i32, i32, i32) {
    %c0_i32 = arith.constant 0 : i32
    %c0_i32_0 = arith.constant 0 : i32
    %c0_i32_1 = arith.constant 0 : i32
    return %arg0, %c0_i32, %c0_i32_0 : i32, i32, i32
  }
  func.func @transform_6(%arg0: i32) -> (i32, i32, i32) {
    %c0_i32 = arith.constant 0 : i32
    %c0_i32_0 = arith.constant 0 : i32
    %c0_i32_1 = arith.constant 0 : i32
    return %arg0, %c0_i32, %c0_i32_0 : i32, i32, i32
  }
}

module attributes {stable_mosaic.version = 11 : i64} {
  func.func @_pool_kernel(%arg0: i32, %arg1: memref<2x16x128xf32, #tpu.memory_space<vmem>>, %arg2: memref<2x16x128xf32, #tpu.memory_space<vmem>>, %arg3: memref<2x16x16xbf16, #tpu.memory_space<vmem>>, %arg4: memref<16x4xf32, #tpu.memory_space<vmem>>, %arg5: memref<2x128x128xf32, #tpu.memory_space<vmem>>, %arg6: memref<2x128x128xf32, #tpu.memory_space<vmem>>) attributes {dimension_semantics = [#tpu.dimension_semantics<parallel>], iteration_bounds = array<i64: 1>, scalar_prefetch = 0 : i64, scratch_operands = 0 : i64, tpu.core_type = #tpu.core_type<tc>, window_params = [{transform_indices = @transform_0, window_bounds = array<i64: 2, 16, 128>}, {transform_indices = @transform_1, window_bounds = array<i64: 2, 16, 128>}, {transform_indices = @transform_2, window_bounds = array<i64: 2, 16, 16>}, {pipeline_mode = #tpu.pipeline_mode<synchronous>, transform_indices = @transform_3, window_bounds = array<i64: 16, 4>}, {transform_indices = @transform_4, window_bounds = array<i64: 2, 128, 128>}, {transform_indices = @transform_5, window_bounds = array<i64: 2, 128, 128>}]} {
    %c0 = arith.constant 0 : index
    %c0_0 = arith.constant 0 : index
    %0 = vector.load %arg4[%c0, %c0_0] : memref<16x4xf32, #tpu.memory_space<vmem>>, vector<16x4xf32>
    %1 = vector.extract_strided_slice %0 {offsets = [0, 0], sizes = [16, 1], strides = [1, 1]} : vector<16x4xf32> to vector<16x1xf32>
    %2 = vector.extract_strided_slice %0 {offsets = [0, 1], sizes = [16, 1], strides = [1, 1]} : vector<16x4xf32> to vector<16x1xf32>
    %3 = vector.extract_strided_slice %0 {offsets = [0, 2], sizes = [16, 1], strides = [1, 1]} : vector<16x4xf32> to vector<16x1xf32>
    %4 = vector.extract_strided_slice %0 {offsets = [0, 3], sizes = [16, 1], strides = [1, 1]} : vector<16x4xf32> to vector<16x1xf32>
    %5 = tpu.iota {dimensions = array<i32: 1>} : vector<1x128xi32>
    %c8_i32 = arith.constant 8 : i32
    %6 = vector.broadcast %c8_i32 : i32 to vector<1x128xi32>
    %7 = arith.cmpi slt, %5, %6 : vector<1x128xi32>
    %c0_1 = arith.constant 0 : index
    %c0_2 = arith.constant 0 : index
    %c0_3 = arith.constant 0 : index
    %8 = vector.load %arg1[%c0_1, %c0_2, %c0_3] : memref<2x16x128xf32, #tpu.memory_space<vmem>>, vector<1x16x128xf32>
    %9 = vector.shape_cast %8 : vector<1x16x128xf32> to vector<16x128xf32>
    %10 = vector.broadcast %1 : vector<16x1xf32> to vector<16x128xf32>
    %11 = arith.subf %9, %10 : vector<16x128xf32>
    %12 = vector.broadcast %2 : vector<16x1xf32> to vector<16x128xf32>
    %13 = arith.mulf %11, %12 : vector<16x128xf32>
    %c0_4 = arith.constant 0 : index
    %c0_5 = arith.constant 0 : index
    %c0_6 = arith.constant 0 : index
    %14 = vector.load %arg2[%c0_4, %c0_5, %c0_6] : memref<2x16x128xf32, #tpu.memory_space<vmem>>, vector<1x16x128xf32>
    %15 = vector.shape_cast %14 : vector<1x16x128xf32> to vector<16x128xf32>
    %16 = vector.broadcast %3 : vector<16x1xf32> to vector<16x128xf32>
    %17 = arith.subf %15, %16 : vector<16x128xf32>
    %18 = vector.broadcast %4 : vector<16x1xf32> to vector<16x128xf32>
    %19 = arith.mulf %17, %18 : vector<16x128xf32>
    %cst = arith.constant -1.000000e+30 : f32
    %20 = vector.shape_cast %7 : vector<1x128xi1> to vector<1x128xi1>
    %21 = vector.broadcast %20 : vector<1x128xi1> to vector<16x128xi1>
    %22 = vector.broadcast %cst : f32 to vector<16x128xf32>
    %23 = arith.select %21, %19, %22 : vector<16x128xi1>, vector<16x128xf32>
    %cst_7 = arith.constant dense<0xFF800000> : vector<16xf32>
    %24 = vector.multi_reduction <maximumf>, %23, %cst_7 [1] : vector<16x128xf32> to vector<16xf32>
    %25 = vector.shape_cast %24 : vector<16xf32> to vector<16x1xf32>
    %26 = vector.broadcast %25 : vector<16x1xf32> to vector<16x128xf32>
    %27 = arith.subf %23, %26 : vector<16x128xf32>
    %28 = math.exp %27 : vector<16x128xf32>
    %cst_8 = arith.constant dense<0.000000e+00> : vector<16xf32>
    %29 = vector.multi_reduction <add>, %28, %cst_8 [1] : vector<16x128xf32> to vector<16xf32>
    %30 = vector.shape_cast %29 : vector<16xf32> to vector<16x1xf32>
    %31 = tpu.reciprocal %30 : vector<16x1xf32> -> vector<16x1xf32>
    %32 = vector.broadcast %31 : vector<16x1xf32> to vector<16x128xf32>
    %33 = arith.mulf %28, %32 : vector<16x128xf32>
    %34 = tpu.transpose %33, [1, 0] : vector<16x128xf32> -> vector<128x16xf32>
    %c0_9 = arith.constant 0 : index
    %c0_10 = arith.constant 0 : index
    %c0_11 = arith.constant 0 : index
    %35 = vector.load %arg3[%c0_9, %c0_10, %c0_11] : memref<2x16x16xbf16, #tpu.memory_space<vmem>>, vector<1x16x16xbf16>
    %36 = vector.shape_cast %35 : vector<1x16x16xbf16> to vector<16x16xbf16>
    %37 = arith.extf %36 : vector<16x16xbf16> to vector<16x16xf32>
    %cst_12 = arith.constant dense<0.000000e+00> : vector<128x128xf32>
    %38 = tpu.matmul %34, %13, %cst_12 {dimension_numbers = #tpu.dot_dimension_numbers<[1], [0], [0], [1], [0, 0, 1, 1], [], []>} : vector<128x16xf32>, vector<16x128xf32>, vector<128x128xf32> -> vector<128x128xf32>
    %c0_13 = arith.constant 0 : index
    %c0_14 = arith.constant 0 : index
    %c0_15 = arith.constant 0 : index
    %39 = vector.load %arg5[%c0_13, %c0_14, %c0_15] : memref<2x128x128xf32, #tpu.memory_space<vmem>>, vector<1x128x128xf32>
    %40 = vector.shape_cast %39 : vector<1x128x128xf32> to vector<128x128xf32>
    %41 = vector.shape_cast %38 : vector<128x128xf32> to vector<1x128x128xf32>
    tpu.vector_store %arg5[%c0_13, %c0_14, %c0_15], %41 {strides = array<i32>} : memref<2x128x128xf32, #tpu.memory_space<vmem>>, vector<1x128x128xf32>,
    %cst_16 = arith.constant dense<0.000000e+00> : vector<128x16xf32>
    %42 = tpu.matmul %34, %37, %cst_16 {dimension_numbers = #tpu.dot_dimension_numbers<[1], [0], [0], [1], [0, 0, 1, 1], [], []>} : vector<128x16xf32>, vector<16x16xf32>, vector<128x16xf32> -> vector<128x16xf32>
    %cst_17 = arith.constant dense<0.000000e+00> : vector<128x128xf32>
    %43 = tpu.matmul %42, %33, %cst_17 {dimension_numbers = #tpu.dot_dimension_numbers<[1], [0], [0], [1], [0, 0, 1, 1], [], []>} : vector<128x16xf32>, vector<16x128xf32>, vector<128x128xf32> -> vector<128x128xf32>
    %c0_18 = arith.constant 0 : index
    %c0_19 = arith.constant 0 : index
    %c0_20 = arith.constant 0 : index
    %44 = vector.load %arg6[%c0_18, %c0_19, %c0_20] : memref<2x128x128xf32, #tpu.memory_space<vmem>>, vector<1x128x128xf32>
    %45 = vector.shape_cast %44 : vector<1x128x128xf32> to vector<128x128xf32>
    %46 = vector.shape_cast %43 : vector<128x128xf32> to vector<1x128x128xf32>
    tpu.vector_store %arg6[%c0_18, %c0_19, %c0_20], %46 {strides = array<i32>} : memref<2x128x128xf32, #tpu.memory_space<vmem>>, vector<1x128x128xf32>,
    %c1 = arith.constant 1 : index
    %c0_21 = arith.constant 0 : index
    %c0_22 = arith.constant 0 : index
    %47 = vector.load %arg1[%c1, %c0_21, %c0_22] : memref<2x16x128xf32, #tpu.memory_space<vmem>>, vector<1x16x128xf32>
    %48 = vector.shape_cast %47 : vector<1x16x128xf32> to vector<16x128xf32>
    %49 = vector.broadcast %1 : vector<16x1xf32> to vector<16x128xf32>
    %50 = arith.subf %48, %49 : vector<16x128xf32>
    %51 = vector.broadcast %2 : vector<16x1xf32> to vector<16x128xf32>
    %52 = arith.mulf %50, %51 : vector<16x128xf32>
    %c1_23 = arith.constant 1 : index
    %c0_24 = arith.constant 0 : index
    %c0_25 = arith.constant 0 : index
    %53 = vector.load %arg2[%c1_23, %c0_24, %c0_25] : memref<2x16x128xf32, #tpu.memory_space<vmem>>, vector<1x16x128xf32>
    %54 = vector.shape_cast %53 : vector<1x16x128xf32> to vector<16x128xf32>
    %55 = vector.broadcast %3 : vector<16x1xf32> to vector<16x128xf32>
    %56 = arith.subf %54, %55 : vector<16x128xf32>
    %57 = vector.broadcast %4 : vector<16x1xf32> to vector<16x128xf32>
    %58 = arith.mulf %56, %57 : vector<16x128xf32>
    %cst_26 = arith.constant -1.000000e+30 : f32
    %59 = vector.shape_cast %7 : vector<1x128xi1> to vector<1x128xi1>
    %60 = vector.broadcast %59 : vector<1x128xi1> to vector<16x128xi1>
    %61 = vector.broadcast %cst_26 : f32 to vector<16x128xf32>
    %62 = arith.select %60, %58, %61 : vector<16x128xi1>, vector<16x128xf32>
    %cst_27 = arith.constant dense<0xFF800000> : vector<16xf32>
    %63 = vector.multi_reduction <maximumf>, %62, %cst_27 [1] : vector<16x128xf32> to vector<16xf32>
    %64 = vector.shape_cast %63 : vector<16xf32> to vector<16x1xf32>
    %65 = vector.broadcast %64 : vector<16x1xf32> to vector<16x128xf32>
    %66 = arith.subf %62, %65 : vector<16x128xf32>
    %67 = math.exp %66 : vector<16x128xf32>
    %cst_28 = arith.constant dense<0.000000e+00> : vector<16xf32>
    %68 = vector.multi_reduction <add>, %67, %cst_28 [1] : vector<16x128xf32> to vector<16xf32>
    %69 = vector.shape_cast %68 : vector<16xf32> to vector<16x1xf32>
    %70 = tpu.reciprocal %69 : vector<16x1xf32> -> vector<16x1xf32>
    %71 = vector.broadcast %70 : vector<16x1xf32> to vector<16x128xf32>
    %72 = arith.mulf %67, %71 : vector<16x128xf32>
    %73 = tpu.transpose %72, [1, 0] : vector<16x128xf32> -> vector<128x16xf32>
    %c1_29 = arith.constant 1 : index
    %c0_30 = arith.constant 0 : index
    %c0_31 = arith.constant 0 : index
    %74 = vector.load %arg3[%c1_29, %c0_30, %c0_31] : memref<2x16x16xbf16, #tpu.memory_space<vmem>>, vector<1x16x16xbf16>
    %75 = vector.shape_cast %74 : vector<1x16x16xbf16> to vector<16x16xbf16>
    %76 = arith.extf %75 : vector<16x16xbf16> to vector<16x16xf32>
    %cst_32 = arith.constant dense<0.000000e+00> : vector<128x128xf32>
    %77 = tpu.matmul %73, %52, %cst_32 {dimension_numbers = #tpu.dot_dimension_numbers<[1], [0], [0], [1], [0, 0, 1, 1], [], []>} : vector<128x16xf32>, vector<16x128xf32>, vector<128x128xf32> -> vector<128x128xf32>
    %c1_33 = arith.constant 1 : index
    %c0_34 = arith.constant 0 : index
    %c0_35 = arith.constant 0 : index
    %78 = vector.load %arg5[%c1_33, %c0_34, %c0_35] : memref<2x128x128xf32, #tpu.memory_space<vmem>>, vector<1x128x128xf32>
    %79 = vector.shape_cast %78 : vector<1x128x128xf32> to vector<128x128xf32>
    %80 = vector.shape_cast %77 : vector<128x128xf32> to vector<1x128x128xf32>
    tpu.vector_store %arg5[%c1_33, %c0_34, %c0_35], %80 {strides = array<i32>} : memref<2x128x128xf32, #tpu.memory_space<vmem>>, vector<1x128x128xf32>,
    %cst_36 = arith.constant dense<0.000000e+00> : vector<128x16xf32>
    %81 = tpu.matmul %73, %76, %cst_36 {dimension_numbers = #tpu.dot_dimension_numbers<[1], [0], [0], [1], [0, 0, 1, 1], [], []>} : vector<128x16xf32>, vector<16x16xf32>, vector<128x16xf32> -> vector<128x16xf32>
    %cst_37 = arith.constant dense<0.000000e+00> : vector<128x128xf32>
    %82 = tpu.matmul %81, %72, %cst_37 {dimension_numbers = #tpu.dot_dimension_numbers<[1], [0], [0], [1], [0, 0, 1, 1], [], []>} : vector<128x16xf32>, vector<16x128xf32>, vector<128x128xf32> -> vector<128x128xf32>
    %c1_38 = arith.constant 1 : index
    %c0_39 = arith.constant 0 : index
    %c0_40 = arith.constant 0 : index
    %83 = vector.load %arg6[%c1_38, %c0_39, %c0_40] : memref<2x128x128xf32, #tpu.memory_space<vmem>>, vector<1x128x128xf32>
    %84 = vector.shape_cast %83 : vector<1x128x128xf32> to vector<128x128xf32>
    %85 = vector.shape_cast %82 : vector<128x128xf32> to vector<1x128x128xf32>
    tpu.vector_store %arg6[%c1_38, %c0_39, %c0_40], %85 {strides = array<i32>} : memref<2x128x128xf32, #tpu.memory_space<vmem>>, vector<1x128x128xf32>,
    return
  }
  func.func @transform_0(%arg0: i32) -> (i32, i32, i32) {
    %c0_i32 = arith.constant 0 : i32
    %c0_i32_0 = arith.constant 0 : i32
    %c0_i32_1 = arith.constant 0 : i32
    return %arg0, %c0_i32, %c0_i32_0 : i32, i32, i32
  }
  func.func @transform_1(%arg0: i32) -> (i32, i32, i32) {
    %c0_i32 = arith.constant 0 : i32
    %c0_i32_0 = arith.constant 0 : i32
    %c0_i32_1 = arith.constant 0 : i32
    return %arg0, %c0_i32, %c0_i32_0 : i32, i32, i32
  }
  func.func @transform_2(%arg0: i32) -> (i32, i32, i32) {
    %c0_i32 = arith.constant 0 : i32
    %c0_i32_0 = arith.constant 0 : i32
    %c0_i32_1 = arith.constant 0 : i32
    return %arg0, %c0_i32, %c0_i32_0 : i32, i32, i32
  }
  func.func @transform_3(%arg0: i32) -> (i32, i32) {
    %c0_i32 = arith.constant 0 : i32
    %c0_i32_0 = arith.constant 0 : i32
    %c0_i32_1 = arith.constant 0 : i32
    return %c0_i32, %c0_i32_0 : i32, i32
  }
  func.func @transform_4(%arg0: i32) -> (i32, i32, i32) {
    %c0_i32 = arith.constant 0 : i32
    %c0_i32_0 = arith.constant 0 : i32
    %c0_i32_1 = arith.constant 0 : i32
    return %arg0, %c0_i32, %c0_i32_0 : i32, i32, i32
  }
  func.func @transform_5(%arg0: i32) -> (i32, i32, i32) {
    %c0_i32 = arith.constant 0 : i32
    %c0_i32_0 = arith.constant 0 : i32
    %c0_i32_1 = arith.constant 0 : i32
    return %arg0, %c0_i32, %c0_i32_0 : i32, i32, i32
  }
}

</mosaic_0001>

<bundles_post_ra>
// kernel: batched_diffpool.2
= control target key start
LH: loop header
LB: loop body
LE: loop exit
PB: predicated region body
PF: predicated region fallthrough
CT: control target
= control target key end

     0   :  { %vm35_vm0 = vcmask 130048   ;;  %v535_v24 = vmov 0.0   ;;  %vm217_vm1 = vcmask 261120   ;;  %v207_v29 = vlaneseq  ;;  %s710_s0 = inlined_call_operand.vmem [shape: f32[2,16,32], index: 0, kind: input, shape index: {}]   ;;  %s711_s1 = inlined_call_operand.vmem [shape: bf16[2,16,16], index: 1, kind: input, shape index: {}]   ;;  %s712_s2 = inlined_call_operand.vmem [shape: f32[32,256], index: 2, kind: input, shape index: {}]   ;;  %s713_s3 = inlined_call_operand.vmem [shape: f32[1,256], index: 3, kind: input, shape index: {}]   ;;  %s714_s4 = inlined_call_operand.vmem [shape: f32[2,16,128], index: 4, kind: output, shape index: {0}]   ;;  %s715_s5 = inlined_call_operand.vmem [shape: f32[2,16,128], index: 5, kind: output, shape index: {1}]   ;;  %s716_s6 = inlined_call_operand.vmem [shape: f32[2,16,4], index: 6, kind: output, shape index: {2}]  }
   0x1   :  { %v33_v0 = vld [vmem:[%s710_s0] sm:$0xff]  ;;  %v34_v1 = vld [vmem:[%s710_s0 + $0x8] sm:$0xff]  ;;  %v459_v2 = vld [vmem:[%s710_s0 + $0x10] sm:$0xff]  ;;  %vm383_vm2 = vcmask 7168   ;;  %vm400_vm3 = vcmask 15368   ;;  %vm413_vm4 = vcmask 23568  }
   0x2   :  { %v498_v3 = vpack.c.bf16 %v34_v1, %v33_v0  ;;  %v460_v4 = vld [vmem:[%s710_s0 + $0x18] sm:$0xff]  ;;  %v468_v5 = vld [vmem:[%s711_s1] sm:$0xff]   ;;  %v475_v6 = vld [vmem:[%s711_s1 + $0x8] sm:$0xff]   ;;  %v208_v30 = vshrl.u32 %v207_v29, 7  ;;  %vm430_vm5 = vcmask 31768  }
   0x3   :  { %v502_v7 = vpack.c.bf16 %v460_v4, %v459_v2  ;;  %v469_v8 = vunpack.c.l.bf16 %v468_v5  ;;  %v473_v9 = vunpack.c.l.bf16 %v475_v6  ;;  %v21_v10 = vld [vmem:[%s712_s2 + $0x8] sm:$0xff]  ;;  %v23_v11 = vld [vmem:[%s712_s2 + $0x18] sm:$0xff]  ;;  %v20_v12 = vld [vmem:[%s712_s2] sm:$0xff]  ;;  %v470_v13 = vunpack.c.h.bf16 %v468_v5 }
   0x4   :  { %499 = vmatprep.subr.bf16.mxu0 %v498_v3  ;;  %v506_v14 = vpack.c.bf16 %v23_v11, %v21_v10  ;;  %v22_v15 = vld [vmem:[%s712_s2 + $0x10] sm:$0xff]  ;;  %v25_v16 = vld [vmem:[%s712_s2 + $0x28] sm:$0xff]  ;;  %v27_v17 = vld [vmem:[%s712_s2 + $0x38] sm:$0xff]  ;;  %v474_v18 = vunpack.c.h.bf16 %v475_v6  ;;  %v209_v31 = vsub.s32 0, %v208_v30  ;;  %v213_v33 = vsub.s32 1, %v208_v30 }
   0x5   :  { %503 = vmatprep.subr.bf16.mxu1 %v502_v7  ;;  %501 = vmatpush3.bf16.msra.mxu0 %v498_v3  ;;  %v508_v19 = vpack.c.bf16 %v22_v15, %v20_v12  ;;  %v510_v20 = vpack.c.bf16 %v27_v17, %v25_v16  ;;  %v24_v21 = vld [vmem:[%s712_s2 + $0x20] sm:$0xff]  ;;  %v26_v22 = vld [vmem:[%s712_s2 + $0x30] sm:$0xff] }
   0x6   :  { %505 = vmatpush3.bf16.msra.mxu1 %v502_v7  ;;  %488 = vmatprep.mubr.msk.f32.mxu0 %vm35_vm0, %v469_v8  ;;  %v512_v23 = vpack.c.bf16 %v26_v22, %v24_v21  ;;  %v28_v32 = vld [vmem:[%s713_s3] sm:$0x3] }
   0x7   :  { %495 = vmatprep.mubr.msk.f32.mxu1 %vm35_vm0, %v473_v9  ;;  %507 = vmatprep.subr.bf16.mxu0 %v506_v14  ;;  %v210_v34 = vrot.slane %v28_v32, %v209_v31  ;;  %v214_v35 = vrot.slane %v28_v32, %v213_v33 }
   0x8   :  { %489 = vmatmul.mubr.msk.f32.vlgmr.msra.gmra.mrb[0].mxu0 %vm35_vm0, %v470_v13  ;;  %514 = vmatprep.subr.bf16.mxu1 %v506_v14 }
   0x9   :  { %496 = vmatmul.mubr.msk.f32.vlgmr.msra.gmra.mrb[0].mxu1 %vm35_vm0, %v474_v18  ;;  %509 = vmatpush1.bf16.msra.mxu0 %v508_v19 }
   0xa   :  { %516 = vmatpush1.bf16.msra.mxu1 %v508_v19  ;;  %511 = vmatprep.subr.bf16.mxu0 %v510_v20 }
   0xb   :  { %515 = vmatprep.subr.bf16.mxu1 %v510_v20  ;;  %294 = vmatprep.mubr.f32.mxu0 %v535_v24 }
   0xc   :  { %306 = vmatprep.mubr.f32.mxu1 %v535_v24 }
   0xd   :  { %513 = vmatpush1.bf16.msra.mxu0 %v512_v23 }
   0xe   :  { %517 = vmatpush1.bf16.msra.mxu1 %v512_v23 }
  0xdb   :  { %v490_v25 = vpop.f32.mrb[0].mxu0 }
  0xdc   :  { %v497_v26 = vpop.f32.mrb[0].mxu1  ;;  %v108_v27 = vpop.f32.mrb[1].mxu0 }
  0xdd   :  { %v197_v28 = vpop.f32.mrb[1].mxu1  ;;  %463 = vmatmul.mubr.msk.f32.vlgmr.msra.gmra.mrb[2].mxu0 %vm217_vm1, %v108_v27 }
  0xde   :  { %465 = vmatmul.mubr.msk.f32.vlgmr.msra.gmra.mrb[2].mxu1 %vm217_vm1, %v197_v28  ;;  %300 = vmatprep.mubr.f32.mxu0 %v535_v24 }
  0xdf   :  { %312 = vmatprep.mubr.f32.mxu1 %v535_v24 }
  0xe1   :  { %464 = vmatmul.mubr.msk.f32.gmra.mrb[4].mxu0 %vm217_vm1, %v490_v25 }
  0xe2   :  { %466 = vmatmul.mubr.msk.f32.gmra.mrb[4].mxu1 %vm217_vm1, %v497_v26 }
 0x1b0   :  { %v296_v36 = vpop.f32.mrb[2].mxu0 }
 0x1b1   :  { %v297_v37 = vadd.f32 %v296_v36, %v210_v34  ;;  %v308_v38 = vpop.f32.mrb[2].mxu1  ;;  %v298_v39 = vpop.f32.mrb[3].mxu0 }
 0x1b2   :  { %v309_v40 = vadd.f32 %v308_v38, %v210_v34  ;;  %v310_v41 = vpop.f32.mrb[3].mxu1  ;;  %v299_v42 = vadd.f32 %v298_v39, %v214_v35 }
 0x1b3   :  { %v319_v43 = vmul.f32 %v297_v37, %v297_v37  ;;  %v620_v54 = vadd.f32 %v310_v41, %v214_v35 }
 0x1b4   :  { %v302_v44 = vpop.f32.mrb[4].mxu0  ;;  %v321_v45 = vmul.f32 %v309_v40, %v309_v40  ;;  %v347_v51 = vmul.f32 %v299_v42, %v299_v42 }
 0x1b5   :  { %v314_v46 = vpop.f32.mrb[4].mxu1  ;;  %v304_v47 = vpop.f32.mrb[5].mxu0  ;;  %323 = vadd.xlane.f32.xlu0 %v319_v43  ;;  %v303_v50 = vadd.f32 %v302_v44, %v210_v34  ;;  %v349_v58 = vmul.f32 %v620_v54, %v620_v54 }
 0x1b6   :  { %v315_v48 = vadd.f32 %v314_v46, %v210_v34  ;;  %327 = vadd.xlane.f32.xlu1 %v321_v45  ;;  %v316_v49 = vpop.f32.mrb[5].mxu1  ;;  %v305_v52 = vadd.f32 %v304_v47, %v214_v35 }
 0x1b7   :  { %v320_v55 = vmul.f32 %v303_v50, %v303_v50  ;;  %v622_v56 = vadd.f32 %v316_v49, %v214_v35 }
 0x1b8   :  { %v322_v53 = vmul.f32 %v315_v48, %v315_v48  ;;  %v348_v57 = vmul.f32 %v305_v52, %v305_v52 }
 0x1b9   :  { %351 = vadd.xlane.f32.xlu0 %v347_v51  ;;  %v350_v59 = vmul.f32 %v622_v56, %v622_v56 }
 0x1ba   :  { %329 = vadd.xlane.f32.xlu1 %v322_v53 }
 0x1bd   :  { %325 = vadd.xlane.f32.xlu0 %v320_v55 }
 0x1be   :  { %353 = vadd.xlane.f32.xlu1 %v348_v57 }
 0x1c1   :  { %355 = vadd.xlane.f32.xlu0 %v349_v58 }
 0x1c2   :  { %357 = vadd.xlane.f32.xlu1 %v350_v59 }
 0x242   :  { %v324_v60 = vpop.xlane.xlu0 %323 }
 0x243   :  { %v328_v61 = vpop.xlane.xlu1 %327  ;;  %v331_v62 = vmax.f32 %v324_v60, 1e-24 }
 0x244   :  { %v333_v63 = vmax.f32 %v328_v61, 1e-24 }
 0x245   :  { %519 = vrsqrt.f32 %v331_v62 }
 0x246   :  { %521 = vrsqrt.f32 %v333_v63  ;;  %v352_v0 = vpop.xlane.xlu0 %351 }
 0x247   :  { %v330_v1 = vpop.xlane.xlu1 %329  ;;  %v359_v2 = vmax.f32 %v352_v0, 1e-24 }
 0x248   :  { %v334_v3 = vmax.f32 %v330_v1, 1e-24 }
 0x249   :  { %523 = vrsqrt.f32 %v359_v2 }
 0x24a   :  { %525 = vrsqrt.f32 %v334_v3  ;;  %v326_v4 = vpop.xlane.xlu0 %325 }
 0x24b   :  { %v354_v5 = vpop.xlane.xlu1 %353  ;;  %v332_v6 = vmax.f32 %v326_v4, 1e-24 }
 0x24c   :  { %v360_v7 = vmax.f32 %v354_v5, 1e-24 }
 0x24d   :  { %527 = vrsqrt.f32 %v332_v6 }
 0x24e   :  { %529 = vrsqrt.f32 %v360_v7  ;;  %v356_v8 = vpop.xlane.xlu0 %355 }
 0x24f   :  { %v520_v9 = vpop.eup %519  ;;  %v358_v10 = vpop.xlane.xlu1 %357  ;;  %v361_v11 = vmax.f32 %v356_v8, 1e-24 }
 0x250   :  { %v522_v12 = vpop.eup %521  ;;  %v362_v13 = vmax.f32 %v358_v10, 1e-24  ;;  %v339_v14 = vmul.f32 %v520_v9, %v297_v37 }
 0x251   :  { %531 = vrsqrt.f32 %v361_v11  ;;  %v341_v15 = vmul.f32 %v522_v12, %v309_v40 }
 0x252   :  { %533 = vrsqrt.f32 %v362_v13  ;;  %v343_v16 = vmax.f32 %v339_v14, 0.0 }
 0x253   :  { %v524_v17 = vpop.eup %523  ;;  %v345_v18 = vmax.f32 %v341_v15, 0.0 }
 0x254   :  { %v526_v19 = vpop.eup %525  ;;  %375 = vadd.xlane.f32.xlu0 %v343_v16  ;;  %435 = vst [vmem:[%s714_s4] sm:$0xff] %v343_v16  ;;  %v367_v20 = vmul.f32 %v524_v17, %v299_v42  ;;  %v388_v36 = vmul.f32 %v343_v16, %v343_v16 }
 0x255   :  { %437 = vst [vmem:[%s714_s4 + $0x10] sm:$0xff] %v345_v18  ;;  %v342_v21 = vmul.f32 %v526_v19, %v315_v48  ;;  %v390_v37 = vmul.f32 %v345_v18, %v345_v18 }
 0x256   :  { %v371_v22 = vmax.f32 %v367_v20, 0.0 }
 0x257   :  { %v528_v23 = vpop.eup %527  ;;  %v346_v24 = vmax.f32 %v342_v21, 0.0 }
 0x258   :  { %v530_v25 = vpop.eup %529  ;;  %379 = vadd.xlane.f32.xlu0 %v345_v18  ;;  %439 = vst [vmem:[%s715_s5] sm:$0xff] %v371_v22  ;;  %v340_v26 = vmul.f32 %v528_v23, %v303_v50  ;;  %v418_v39 = vmul.f32 %v371_v22, %v371_v22 }
 0x259   :  { %438 = vst [vmem:[%s714_s4 + $0x18] sm:$0xff] %v346_v24  ;;  %v368_v27 = vmul.f32 %v530_v25, %v305_v52  ;;  %v391_v40 = vmul.f32 %v346_v24, %v346_v24 }
 0x25a   :  { %v344_v28 = vmax.f32 %v340_v26, 0.0 }
 0x25b   :  { %v532_v29 = vpop.eup %531  ;;  %v372_v30 = vmax.f32 %v368_v27, 0.0 }
 0x25c   :  { %v534_v31 = vpop.eup %533  ;;  %405 = vadd.xlane.f32.xlu0 %v371_v22  ;;  %377 = vadd.xlane.f32.xlu1 %v344_v28  ;;  %436 = vst [vmem:[%s714_s4 + $0x8] sm:$0xff] %v344_v28  ;;  %v369_v32 = vmul.f32 %v532_v29, %v620_v54  ;;  %v389_v38 = vmul.f32 %v344_v28, %v344_v28 }
 0x25d   :  { %440 = vst [vmem:[%s715_s5 + $0x8] sm:$0xff] %v372_v30  ;;  %v370_v33 = vmul.f32 %v534_v31, %v622_v56  ;;  %v419_v42 = vmul.f32 %v372_v30, %v372_v30 }
 0x25e   :  { %v373_v34 = vmax.f32 %v369_v32, 0.0 }
 0x25f   :  { %v374_v35 = vmax.f32 %v370_v33, 0.0 }
 0x260   :  { %381 = vadd.xlane.f32.xlu1 %v346_v24  ;;  %409 = vadd.xlane.f32.xlu0 %v373_v34  ;;  %441 = vst [vmem:[%s715_s5 + $0x10] sm:$0xff] %v373_v34  ;;  %v420_v41 = vmul.f32 %v373_v34, %v373_v34 }
 0x261   :  { %442 = vst [vmem:[%s715_s5 + $0x18] sm:$0xff] %v374_v35  ;;  %v421_v43 = vmul.f32 %v374_v35, %v374_v35 }
 0x264   :  { %407 = vadd.xlane.f32.xlu1 %v372_v30  ;;  %392 = vadd.xlane.f32.xlu0 %v388_v36 }
 0x268   :  { %411 = vadd.xlane.f32.xlu1 %v374_v35  ;;  %396 = vadd.xlane.f32.xlu0 %v390_v37 }
 0x26c   :  { %394 = vadd.xlane.f32.xlu1 %v389_v38  ;;  %422 = vadd.xlane.f32.xlu0 %v418_v39 }
 0x270   :  { %398 = vadd.xlane.f32.xlu1 %v391_v40  ;;  %426 = vadd.xlane.f32.xlu0 %v420_v41 }
 0x274   :  { %424 = vadd.xlane.f32.xlu1 %v419_v42 }
 0x278   :  { %428 = vadd.xlane.f32.xlu1 %v421_v43 }
 0x2e1   :  { %v376_v44 = vpop.xlane.xlu0 %375 }
 0x2e2   :  { %384 = vst.msk [vmem:[%s716_s6] sm:$0xff] %vm383_vm2, %v376_v44 }
 0x2e5   :  { %v380_v45 = vpop.xlane.xlu0 %379 }
 0x2e6   :  { %386 = vst.msk [vmem:[%s716_s6 + $0x10] sm:$0xff] %vm383_vm2, %v380_v45 }
 0x2e9   :  { %v378_v46 = vpop.xlane.xlu1 %377  ;;  %v406_v47 = vpop.xlane.xlu0 %405 }
 0x2ea   :  { %385 = vst.msk [vmem:[%s716_s6 + $0x8] sm:$0xff] %vm383_vm2, %v378_v46 }
 0x2ed   :  { %v382_v48 = vpop.xlane.xlu1 %381  ;;  %v410_v49 = vpop.xlane.xlu0 %409 }
 0x2ee   :  { %387 = vst.msk [vmem:[%s716_s6 + $0x18] sm:$0xff] %vm383_vm2, %v382_v48 }
 0x2f1   :  { %v408_v50 = vpop.xlane.xlu1 %407  ;;  %v393_v51 = vpop.xlane.xlu0 %392 }
 0x2f2   :  { %401 = vst.msk [vmem:[%s716_s6] sm:$0xff] %vm400_vm3, %v393_v51 }
 0x2f3   :  { %414 = vst.msk [vmem:[%s716_s6] sm:$0xff] %vm413_vm4, %v406_v47 }
 0x2f5   :  { %v412_v52 = vpop.xlane.xlu1 %411  ;;  %v397_v53 = vpop.xlane.xlu0 %396 }
 0x2f6   :  { %403 = vst.msk [vmem:[%s716_s6 + $0x10] sm:$0xff] %vm400_vm3, %v397_v53 }
 0x2f7   :  { %416 = vst.msk [vmem:[%s716_s6 + $0x10] sm:$0xff] %vm413_vm4, %v410_v49 }
 0x2f9   :  { %v395_v54 = vpop.xlane.xlu1 %394  ;;  %v423_v55 = vpop.xlane.xlu0 %422 }
 0x2fa   :  { %402 = vst.msk [vmem:[%s716_s6 + $0x8] sm:$0xff] %vm400_vm3, %v395_v54 }
 0x2fb   :  { %431 = vst.msk [vmem:[%s716_s6] sm:$0xff] %vm430_vm5, %v423_v55 }
 0x2fc   :  { %415 = vst.msk [vmem:[%s716_s6 + $0x8] sm:$0xff] %vm413_vm4, %v408_v50 }
 0x2fd   :  { %v399_v56 = vpop.xlane.xlu1 %398  ;;  %v427_v57 = vpop.xlane.xlu0 %426 }
 0x2fe   :  { %404 = vst.msk [vmem:[%s716_s6 + $0x18] sm:$0xff] %vm400_vm3, %v399_v56 }
 0x2ff   :  { %433 = vst.msk [vmem:[%s716_s6 + $0x10] sm:$0xff] %vm430_vm5, %v427_v57 }
 0x300   :  { %417 = vst.msk [vmem:[%s716_s6 + $0x18] sm:$0xff] %vm413_vm4, %v412_v52 }
 0x301   :  { %v425_v58 = vpop.xlane.xlu1 %424 }
 0x302   :  { %432 = vst.msk [vmem:[%s716_s6 + $0x8] sm:$0xff] %vm430_vm5, %v425_v58 }
 0x305   :  { %v429_v59 = vpop.xlane.xlu1 %428 }
 0x306   :  { %434 = vst.msk [vmem:[%s716_s6 + $0x18] sm:$0xff] %vm430_vm5, %v429_v59 }

// kernel: batched_diffpool.3
= control target key start
LH: loop header
LB: loop body
LE: loop exit
PB: predicated region body
PF: predicated region fallthrough
CT: control target
= control target key end

     0   :  { %v1806_v0 = vmov 3   ;;  %v1807_v1 = vmov 2   ;;  %v21_v4 = vlaneseq  ;;  %v1808_v26 = vmov 0   ;;  %s2204_s3 = inlined_call_operand.vmem [shape: f32[16,4], index: 3, kind: input, shape index: {}]   ;;  %s2205_s1 = inlined_call_operand.vmem [shape: f32[2,16,128], index: 1, kind: input, shape index: {}]   ;;  %s2206_s2 = inlined_call_operand.vmem [shape: bf16[2,16,16], index: 2, kind: input, shape index: {}]   ;;  %s2207_s0 = inlined_call_operand.vmem [shape: f32[2,16,128], index: 0, kind: input, shape index: {}]   ;;  %s2208_s4 = inlined_call_operand.vmem [shape: f32[2,128,128], index: 4, kind: output, shape index: {0}]   ;;  %s2209_s5 = inlined_call_operand.vmem [shape: f32[2,128,128], index: 5, kind: output, shape index: {1}]  }
   0x1   :  { %1785 = vset.pattern.permute.xlu1 %v1806_v0  ;;  %1784 = vset.pattern.permute.xlu0 %v1807_v1  ;;  %v1844_v2 = vld [vmem:[%s2204_s3] sm:$0xff]  ;;  %v20_v3 = vld [vmem:[%s2204_s3 + $0x8] sm:$0xff]  ;;  %v1386_v6 = vld [vmem:[%s2205_s1 + $0x10] sm:$0xff]  ;;  %v1809_v35 = vmov 1   ;;  %vm128_vm1 = vcmask 130048  }
   0x2   :  { %61 = vperm.xlu1 %1785, %v1844_v2   ;;  %51 = vperm.xlu0 %1784, %v1844_v2   ;;  %v48_v5 = vld [vmem:[%s2205_s1] sm:$0xff]  ;;  %v22_v7 = vand.u32 127, %v21_v4  ;;  %v49_v12 = vld [vmem:[%s2205_s1 + $0x8] sm:$0xff]  ;;  %v1387_v13 = vld [vmem:[%s2205_s1 + $0x18] sm:$0xff] }
   0x3   :  { %v1471_v45 = vld [vmem:[%s2206_s2] sm:$0xff]  }
   0x4   :  { %vm23_vm0 = vcmp.lt.s32.totalorder %v22_v7, 8  ;;  %1760 = vmatprep.subr.bf16.mxu1 %v1471_v45 }
   0x5   :  { %1762 = vmatpush3.bf16.msra.mxu1 %v1471_v45 }
   0x6   :  { %65 = vperm.xlu1 %1785, %v20_v3   ;;  %55 = vperm.xlu0 %1784, %v20_v3  }
   0xa   :  { %1786 = vset.pattern.permute.xlu0 %v1808_v26 }
  0x81   :  { %v62_v8 = vpop.permute.xlu1 %61  ;;  %v52_v9 = vpop.permute.xlu0 %51 }
  0x82   :  { %v58_v10 = vsub.f32 %v48_v5, %v52_v9  ;;  %v702_v11 = vsub.f32 %v1386_v6, %v52_v9 }
  0x84   :  { %v68_v14 = vmul.f32 %v62_v8, %v58_v10  ;;  %v704_v15 = vmul.f32 %v702_v11, %v62_v8 }
  0x85   :  { %v56_v16 = vpop.permute.xlu0 %55  ;;  %v66_v21 = vpop.permute.xlu1 %65 }
  0x86   :  { %v59_v17 = vsub.f32 %v49_v12, %v56_v16  ;;  %v703_v18 = vsub.f32 %v1387_v13, %v56_v16  ;;  %v72_v19 = vsel %vm23_vm0, %v68_v14, -1e+30  ;;  %v706_v20 = vsel %vm23_vm0, %v704_v15, -1e+30  ;;  %v25_v14 = vld [vmem:[%s2207_s0 + $0x8] sm:$0xff]  ;;  %v1385_v15 = vld [vmem:[%s2207_s0 + $0x18] sm:$0xff] }
  0x87   :  { %74 = vmax.xlane.f32.xlu0 %v72_v19  ;;  %v24_v16 = vld [vmem:[%s2207_s0] sm:$0xff] }
  0x88   :  { %v69_v22 = vmul.f32 %v66_v21, %v59_v17  ;;  %v705_v23 = vmul.f32 %v703_v18, %v66_v21  ;;  %v1384_v17 = vld [vmem:[%s2207_s0 + $0x10] sm:$0xff] }
  0x8a   :  { %v73_v24 = vsel %vm23_vm0, %v69_v22, -1e+30  ;;  %v707_v25 = vsel %vm23_vm0, %v705_v23, -1e+30 }
  0x8b   :  { %76 = vmax.xlane.f32.xlu1 %v73_v24 }
 0x114   :  { %v75_v27 = vpop.xlane.xlu0 %74 }
 0x115   :  { %v78_v28 = vsub.f32 %v72_v19, %v75_v27 }
 0x117   :  { %v80_v29 = vmul.f32 1.442695, %v78_v28 }
 0x118   :  { %v77_v30 = vpop.xlane.xlu1 %76 }
 0x119   :  { %1790 = vpow2.f32 %v80_v29  ;;  %v79_v31 = vsub.f32 %v73_v24, %v77_v30  ;;  %v1478_v29 = vld [vmem:[%s2206_s2 + $0x8] sm:$0xff]  }
 0x11b   :  { %v82_v32 = vmul.f32 1.442695, %v79_v31 }
 0x11d   :  { %1792 = vpow2.f32 %v82_v32 }
 0x123   :  { %v1791_v33 = vpop.eup %1790 }
 0x124   :  { %84 = vadd.xlane.f32.xlu0 %v1791_v33 }
 0x127   :  { %v1793_v34 = vpop.eup %1792 }
 0x128   :  { %86 = vadd.xlane.f32.xlu0 %v1793_v34 }
 0x12c   :  { %708 = vmax.xlane.f32.xlu0 %v706_v20 }
 0x130   :  { %710 = vmax.xlane.f32.xlu0 %v707_v25 }
 0x146   :  { %28 = vperm.xlu0 %1786, %v1844_v2  }
 0x14a   :  { %33 = vperm.xlu0 %1786, %v20_v3  }
 0x14e   :  { %1788 = vset.pattern.permute.xlu0 %v1809_v35 }
 0x14f   :  { %43 = vperm.xlu0 %1788, %v20_v3  }
 0x1b1   :  { %v85_v36 = vpop.xlane.xlu0 %84 }
 0x1b2   :  { %1794 = vrcp.f32 %v85_v36 }
 0x1b5   :  { %v87_v37 = vpop.xlane.xlu0 %86 }
 0x1b6   :  { %1796 = vrcp.f32 %v87_v37 }
 0x1b9   :  { %v709_v38 = vpop.xlane.xlu0 %708 }
 0x1ba   :  { %v712_v39 = vsub.f32 %v706_v20, %v709_v38 }
 0x1bc   :  { %v1795_v40 = vpop.eup %1794  ;;  %v714_v41 = vmul.f32 1.442695, %v712_v39 }
 0x1bd   :  { %v711_v42 = vpop.xlane.xlu0 %710  ;;  %v90_v43 = vmul.f32 %v1795_v40, %v1791_v33 }
 0x1be   :  { %1798 = vpow2.f32 %v714_v41  ;;  %v713_v44 = vsub.f32 %v707_v25, %v711_v42 }
 0x1bf   :  { %92 = vxpose.xlu1.b32.start [1/2] (short) %v90_v43, 128 }
 0x1c0   :  { %v1797_v46 = vpop.eup %1796  ;;  %v716_v47 = vmul.f32 1.442695, %v713_v44 }
 0x1c1   :  { %v91_v48 = vmul.f32 %v1797_v46, %v1793_v34 }
 0x1c2   :  { %1800 = vpow2.f32 %v716_v47 }
 0x1c3   :  { %93 = vxpose.xlu1.b32.end [2/2] (short) %v91_v48, 128  ;;  %v1867_v49 = vpack.c.bf16 %v91_v48, %v90_v43 }
 0x1c5   :  { %v29_v54 = vpop.permute.xlu0 %28 }
 0x1c6   :  { %v36_v20 = vsub.f32 %v24_v16, %v29_v54 }
 0x1c8   :  { %v1799_v50 = vpop.eup %1798 }
 0x1c9   :  { %718 = vadd.xlane.f32.xlu0 %v1799_v50  ;;  %v34_v56 = vpop.permute.xlu0 %33 }
 0x1ca   :  { %v37_v18 = vsub.f32 %v25_v14, %v34_v56  ;;  %v696_v19 = vsub.f32 %v1385_v15, %v34_v56 }
 0x1cc   :  { %v1801_v51 = vpop.eup %1800 }
 0x1cd   :  { %720 = vadd.xlane.f32.xlu0 %v1801_v51 }
 0x1ce   :  { %v44_v59 = vpop.permute.xlu0 %43 }
 0x1cf   :  { %v47_v22 = vmul.f32 %v44_v59, %v37_v18  ;;  %v698_v23 = vmul.f32 %v696_v19, %v44_v59 }
 0x1e1   :  { %1787 = vset.pattern.permute.xlu1 %v1809_v35 }
 0x219   :  { %39 = vperm.xlu1 %1787, %v1844_v2  }
 0x23f   :  { %v108_v52 = vpop.trf.xlu1 }
 0x240   :  { %1591 = vmatprep.mubr.msk.f32.mxu0 %vm128_vm1, %v108_v52  ;;  %1619 = vmatprep.mubr.msk.f32.mxu1 %vm128_vm1, %v108_v52 }
 0x243   :  { %v1872_v53 = vpop.trf.xlu1 }
 0x244   :  { %1620 = vmatmul.mubr.msk.f32.vlgmr.msra.gmra.mrb[0].mxu1 %vm128_vm1, %v1872_v53 }
 0x247   :  { %v1876_v55 = vpop.trf.xlu1 }
 0x248   :  { %1622 = vmatprep.mubr.msk.f32.mxu1 %vm128_vm1, %v1876_v55 }
 0x24b   :  { %v1880_v57 = vpop.trf.xlu1 }
 0x24c   :  { %1623 = vmatmul.mubr.msk.f32.gmra.mrb[2].mxu1 %vm128_vm1, %v1880_v57 }
 0x24f   :  { %v1884_v58 = vpop.trf.xlu1 }
 0x250   :  { %1625 = vmatprep.mubr.msk.f32.mxu1 %vm128_vm1, %v1884_v58 }
 0x253   :  { %v113_v60 = vpop.trf.xlu1 }
 0x254   :  { %1626 = vmatmul.mubr.msk.f32.gmra.mrb[4].mxu1 %vm128_vm1, %v113_v60 }
 0x256   :  { %v719_v61 = vpop.xlane.xlu0 %718 }
 0x257   :  { %1802 = vrcp.f32 %v719_v61  ;;  %v114_v62 = vpop.trf.xlu1 }
 0x258   :  { %1628 = vmatprep.mubr.msk.f32.mxu1 %vm128_vm1, %v114_v62 }
 0x25a   :  { %v721_v63 = vpop.xlane.xlu0 %720 }
 0x25b   :  { %1804 = vrcp.f32 %v721_v63  ;;  %v115_v1 = vpop.trf.xlu1 }
 0x25c   :  { %1629 = vmatmul.mubr.msk.f32.gmra.mrb[6].mxu1 %vm128_vm1, %v115_v1 }
 0x25f   :  { %v116_v2 = vpop.trf.xlu1 }
 0x260   :  { %1631 = vmatprep.mubr.msk.f32.mxu1 %vm128_vm1, %v116_v2 }
 0x261   :  { %v1803_v3 = vpop.eup %1802 }
 0x262   :  { %v724_v4 = vmul.f32 %v1803_v3, %v1799_v50 }
 0x263   :  { %v117_v5 = vpop.trf.xlu1 }
 0x264   :  { %1632 = vmatmul.mubr.msk.f32.gmra.mrb[8].mxu1 %vm128_vm1, %v117_v5  ;;  %726 = vxpose.xlu0.b32.start [1/2] (short) %v724_v4, 128 }
 0x265   :  { %v1805_v6 = vpop.eup %1804 }
 0x266   :  { %v725_v7 = vmul.f32 %v1805_v6, %v1801_v51 }
 0x267   :  { %v118_v8 = vpop.trf.xlu1 }
 0x268   :  { %1634 = vmatprep.mubr.msk.f32.mxu1 %vm128_vm1, %v118_v8  ;;  %727 = vxpose.xlu0.b32.end [2/2] (short) %v725_v7, 128  ;;  %v1775_v28 = vpack.c.bf16 %v725_v7, %v724_v4 }
 0x26b   :  { %v119_v9 = vpop.trf.xlu1 }
 0x26c   :  { %1635 = vmatmul.mubr.msk.f32.gmra.mrb[10].mxu1 %vm128_vm1, %v119_v9 }
 0x26f   :  { %v120_v10 = vpop.trf.xlu1 }
 0x270   :  { %1637 = vmatprep.mubr.msk.f32.mxu1 %vm128_vm1, %v120_v10 }
 0x273   :  { %v121_v11 = vpop.trf.xlu1 }
 0x274   :  { %1638 = vmatmul.mubr.msk.f32.gmra.mrb[12].mxu1 %vm128_vm1, %v121_v11 }
 0x277   :  { %v122_v12 = vpop.trf.xlu1 }
 0x278   :  { %1640 = vmatprep.mubr.msk.f32.mxu1 %vm128_vm1, %v122_v12 }
 0x27b   :  { %v123_v13 = vpop.trf.xlu1 }
 0x27c   :  { %1641 = vmatmul.mubr.msk.f32.gmra.mrb[14].mxu1 %vm128_vm1, %v123_v13 }
 0x291   :  { %1789 = vset.pattern.permute.xlu0 %v1806_v0  ;;  %v695_v0 = vsub.f32 %v1384_v17, %v29_v54 }
 0x298   :  { %v40_v21 = vpop.permute.xlu1 %39 }
 0x299   :  { %v46_v24 = vmul.f32 %v40_v21, %v36_v20  ;;  %v697_v25 = vmul.f32 %v695_v0, %v40_v21 }
 0x29b   :  { %v1767_v26 = vpack.c.bf16 %v698_v23, %v697_v25  ;;  %v1755_v27 = vpack.c.bf16 %v47_v22, %v46_v24 }
 0x29d   :  { %1756 = vmatprep.subr.bf16.mxu0 %v1755_v27  ;;  %1768 = vmatprep.subr.bf16.mxu1 %v1767_v26 }
 0x29e   :  { %1758 = vmatpush3.bf16.msra.mxu0 %v1755_v27  ;;  %1770 = vmatpush3.bf16.msra.mxu1 %v1767_v26 }
 0x29f   :  { %1764 = vmatprep.subr.bf16.mxu0 %v1867_v49  ;;  %1776 = vmatprep.subr.bf16.mxu1 %v1775_v28 }
 0x2a1   :  { %1592 = vmatmul.mubr.msk.f32.vlgmr.msra.gmra.mrb[0].mxu0 %vm128_vm1, %v1872_v53 }
 0x2a2   :  { %1594 = vmatprep.mubr.msk.f32.mxu0 %vm128_vm1, %v1876_v55  ;;  %1766 = vmatpush3.bf16.msra.mxu0 %v1867_v49 }
 0x2a3   :  { %1772 = vmatprep.subr.bf16.mxu0 %v1478_v29 }
 0x2a5   :  { %1595 = vmatmul.mubr.msk.f32.gmra.mrb[2].mxu0 %vm128_vm1, %v1880_v57 }
 0x2a6   :  { %1597 = vmatprep.mubr.msk.f32.mxu0 %vm128_vm1, %v1884_v58 }
 0x2a9   :  { %1598 = vmatmul.mubr.msk.f32.gmra.mrb[4].mxu0 %vm128_vm1, %v113_v60 }
 0x2aa   :  { %1600 = vmatprep.mubr.msk.f32.mxu0 %vm128_vm1, %v114_v62 }
 0x2ad   :  { %1601 = vmatmul.mubr.msk.f32.gmra.mrb[6].mxu0 %vm128_vm1, %v115_v1 }
 0x2ae   :  { %1603 = vmatprep.mubr.msk.f32.mxu0 %vm128_vm1, %v116_v2 }
 0x2b1   :  { %1604 = vmatmul.mubr.msk.f32.gmra.mrb[8].mxu0 %vm128_vm1, %v117_v5 }
 0x2b2   :  { %1606 = vmatprep.mubr.msk.f32.mxu0 %vm128_vm1, %v118_v8 }
 0x2b5   :  { %1607 = vmatmul.mubr.msk.f32.gmra.mrb[10].mxu0 %vm128_vm1, %v119_v9 }
 0x2b6   :  { %1609 = vmatprep.mubr.msk.f32.mxu0 %vm128_vm1, %v120_v10 }
 0x2b9   :  { %1610 = vmatmul.mubr.msk.f32.gmra.mrb[12].mxu0 %vm128_vm1, %v121_v11 }
 0x2ba   :  { %1612 = vmatprep.mubr.msk.f32.mxu0 %vm128_vm1, %v122_v12 }
 0x2bd   :  { %1613 = vmatmul.mubr.msk.f32.gmra.mrb[14].mxu0 %vm128_vm1, %v123_v13 }
 0x2e4   :  { %v1936_v30 = vpop.trf.xlu0 }
 0x2e5   :  { %1675 = vmatprep.mubr.msk.f32.mxu1 %vm128_vm1, %v1936_v30 }
 0x2e8   :  { %v1940_v31 = vpop.trf.xlu0 }
 0x2e9   :  { %1676 = vmatmul.mubr.msk.f32.vlgmr.msra.gmra.mrb[16].mxu1 %vm128_vm1, %v1940_v31 }
 0x2ea   :  { %1778 = vmatpush3.bf16.msra.mxu1 %v1775_v28 }
 0x2ec   :  { %v1944_v32 = vpop.trf.xlu0 }
 0x2ed   :  { %1678 = vmatprep.mubr.msk.f32.mxu1 %vm128_vm1, %v1944_v32 }
 0x2f0   :  { %v745_v33 = vpop.trf.xlu0 }
 0x2f1   :  { %1679 = vmatmul.mubr.msk.f32.gmra.mrb[18].mxu1 %vm128_vm1, %v745_v33 }
 0x2f4   :  { %v746_v34 = vpop.trf.xlu0 }
 0x2f5   :  { %1681 = vmatprep.mubr.msk.f32.mxu1 %vm128_vm1, %v746_v34 }
 0x2f8   :  { %v747_v35 = vpop.trf.xlu0 }
 0x2f9   :  { %1682 = vmatmul.mubr.msk.f32.gmra.mrb[20].mxu1 %vm128_vm1, %v747_v35 }
 0x2fc   :  { %v748_v36 = vpop.trf.xlu0 }
 0x2fd   :  { %1684 = vmatprep.mubr.msk.f32.mxu1 %vm128_vm1, %v748_v36 }
 0x300   :  { %v749_v37 = vpop.trf.xlu0 }
 0x301   :  { %1685 = vmatmul.mubr.msk.f32.gmra.mrb[22].mxu1 %vm128_vm1, %v749_v37 }
 0x304   :  { %v750_v38 = vpop.trf.xlu0 }
 0x305   :  { %1687 = vmatprep.mubr.msk.f32.mxu1 %vm128_vm1, %v750_v38 }
 0x308   :  { %v751_v39 = vpop.trf.xlu0 }
 0x309   :  { %1688 = vmatmul.mubr.msk.f32.gmra.mrb[24].mxu1 %vm128_vm1, %v751_v39 }
 0x30c   :  { %v752_v40 = vpop.trf.xlu0 }
 0x30d   :  { %1690 = vmatprep.mubr.msk.f32.mxu1 %vm128_vm1, %v752_v40 }
 0x310   :  { %v753_v41 = vpop.trf.xlu0 }
 0x311   :  { %1691 = vmatmul.mubr.msk.f32.gmra.mrb[26].mxu1 %vm128_vm1, %v753_v41 }
 0x314   :  { %v754_v42 = vpop.trf.xlu0 }
 0x315   :  { %1693 = vmatprep.mubr.msk.f32.mxu1 %vm128_vm1, %v754_v42 }
 0x317   :  { %v1621_v43 = vpop.f32.mrb[0].mxu1 }
 0x318   :  { %v404_v44 = vpop.f32.mrb[1].mxu1  ;;  %v755_v45 = vpop.trf.xlu0 }
 0x319   :  { %1647 = vmatprep.mubr.msk.f32.mxu0 %vm128_vm1, %v404_v44  ;;  %1694 = vmatmul.mubr.msk.f32.gmra.mrb[28].mxu1 %vm128_vm1, %v755_v45 }
 0x31a   :  { %1648 = vmatmul.mubr.msk.f32.vlgmr.msra.gmra.mrb[16].mxu0 %vm128_vm1, %v1621_v43 }
 0x31b   :  { %1774 = vmatpush3.bf16.msra.mxu0 %v1478_v29 }
 0x31c   :  { %v756_v46 = vpop.trf.xlu0 }
 0x31d   :  { %1696 = vmatprep.mubr.msk.f32.mxu1 %vm128_vm1, %v756_v46 }
 0x31f   :  { %v1624_v47 = vpop.f32.mrb[2].mxu1 }
 0x320   :  { %v414_v48 = vpop.f32.mrb[3].mxu1  ;;  %v757_v49 = vpop.trf.xlu0 }
 0x321   :  { %1650 = vmatprep.mubr.msk.f32.mxu0 %vm128_vm1, %v414_v48  ;;  %1697 = vmatmul.mubr.msk.f32.gmra.mrb[30].mxu1 %vm128_vm1, %v757_v49 }
 0x322   :  { %1651 = vmatmul.mubr.msk.f32.gmra.mrb[18].mxu0 %vm128_vm1, %v1624_v47 }
 0x327   :  { %v1627_v50 = vpop.f32.mrb[4].mxu1 }
 0x328   :  { %v424_v51 = vpop.f32.mrb[5].mxu1 }
 0x329   :  { %1653 = vmatprep.mubr.msk.f32.mxu0 %vm128_vm1, %v424_v51 }
 0x32a   :  { %1654 = vmatmul.mubr.msk.f32.gmra.mrb[20].mxu0 %vm128_vm1, %v1627_v50 }
 0x32f   :  { %v1630_v52 = vpop.f32.mrb[6].mxu1 }
 0x330   :  { %v434_v53 = vpop.f32.mrb[7].mxu1 }
 0x331   :  { %1656 = vmatprep.mubr.msk.f32.mxu0 %vm128_vm1, %v434_v53 }
 0x332   :  { %1657 = vmatmul.mubr.msk.f32.gmra.mrb[22].mxu0 %vm128_vm1, %v1630_v52 }
 0x337   :  { %v1633_v54 = vpop.f32.mrb[8].mxu1 }
 0x338   :  { %v444_v55 = vpop.f32.mrb[9].mxu1 }
 0x339   :  { %1659 = vmatprep.mubr.msk.f32.mxu0 %vm128_vm1, %v444_v55 }
 0x33a   :  { %1660 = vmatmul.mubr.msk.f32.gmra.mrb[24].mxu0 %vm128_vm1, %v1633_v54 }
 0x33f   :  { %v1636_v56 = vpop.f32.mrb[10].mxu1 }
 0x340   :  { %v454_v57 = vpop.f32.mrb[11].mxu1 }
 0x341   :  { %1662 = vmatprep.mubr.msk.f32.mxu0 %vm128_vm1, %v454_v57 }
 0x342   :  { %1663 = vmatmul.mubr.msk.f32.gmra.mrb[26].mxu0 %vm128_vm1, %v1636_v56 }
 0x347   :  { %v1639_v58 = vpop.f32.mrb[12].mxu1 }
 0x348   :  { %v464_v59 = vpop.f32.mrb[13].mxu1 }
 0x349   :  { %1665 = vmatprep.mubr.msk.f32.mxu0 %vm128_vm1, %v464_v59 }
 0x34a   :  { %1666 = vmatmul.mubr.msk.f32.gmra.mrb[28].mxu0 %vm128_vm1, %v1639_v58 }
 0x34f   :  { %v1642_v60 = vpop.f32.mrb[14].mxu1 }
 0x350   :  { %v474_v61 = vpop.f32.mrb[15].mxu1 }
 0x351   :  { %1668 = vmatprep.mubr.msk.f32.mxu0 %vm128_vm1, %v474_v61 }
 0x352   :  { %1669 = vmatmul.mubr.msk.f32.gmra.mrb[30].mxu0 %vm128_vm1, %v1642_v60 }
 0x353   :  { %1703 = vmatprep.mubr.msk.f32.mxu0 %vm128_vm1, %v1936_v30 }
 0x356   :  { %1704 = vmatmul.mubr.msk.f32.vlgmr.msra.gmra.mrb[32].mxu0 %vm128_vm1, %v1940_v31 }
 0x357   :  { %1706 = vmatprep.mubr.msk.f32.mxu0 %vm128_vm1, %v1944_v32 }
 0x35a   :  { %1707 = vmatmul.mubr.msk.f32.gmra.mrb[34].mxu0 %vm128_vm1, %v745_v33 }
 0x35b   :  { %1709 = vmatprep.mubr.msk.f32.mxu0 %vm128_vm1, %v746_v34 }
 0x35e   :  { %1710 = vmatmul.mubr.msk.f32.gmra.mrb[36].mxu0 %vm128_vm1, %v747_v35 }
 0x35f   :  { %1712 = vmatprep.mubr.msk.f32.mxu0 %vm128_vm1, %v748_v36 }
 0x362   :  { %1713 = vmatmul.mubr.msk.f32.gmra.mrb[38].mxu0 %vm128_vm1, %v749_v37 }
 0x363   :  { %1715 = vmatprep.mubr.msk.f32.mxu0 %vm128_vm1, %v750_v38 }
 0x366   :  { %1716 = vmatmul.mubr.msk.f32.gmra.mrb[40].mxu0 %vm128_vm1, %v751_v39 }
 0x367   :  { %1718 = vmatprep.mubr.msk.f32.mxu0 %vm128_vm1, %v752_v40 }
 0x36a   :  { %1719 = vmatmul.mubr.msk.f32.gmra.mrb[42].mxu0 %vm128_vm1, %v753_v41 }
 0x36b   :  { %1721 = vmatprep.mubr.msk.f32.mxu0 %vm128_vm1, %v754_v42 }
 0x36e   :  { %1722 = vmatmul.mubr.msk.f32.gmra.mrb[44].mxu0 %vm128_vm1, %v755_v45 }
 0x36f   :  { %1724 = vmatprep.mubr.msk.f32.mxu0 %vm128_vm1, %v756_v46 }
 0x372   :  { %1725 = vmatmul.mubr.msk.f32.gmra.mrb[46].mxu0 %vm128_vm1, %v757_v49 }
 0x374   :  { %v1593_v62 = vpop.f32.mrb[0].mxu0 }
 0x375   :  { %323 = vst [vmem:[%s2208_s4 + $0x8] sm:$0xff] %v1593_v62  ;;  %v243_v63 = vpop.f32.mrb[1].mxu0 }
 0x376   :  { %322 = vst [vmem:[%s2208_s4] sm:$0xff] %v243_v63 }
 0x378   :  { %v1596_v1 = vpop.f32.mrb[2].mxu0 }
 0x379   :  { %325 = vst [vmem:[%s2208_s4 + $0x18] sm:$0xff] %v1596_v1  ;;  %v253_v2 = vpop.f32.mrb[3].mxu0 }
 0x37a   :  { %324 = vst [vmem:[%s2208_s4 + $0x10] sm:$0xff] %v253_v2 }
 0x37c   :  { %v1599_v3 = vpop.f32.mrb[4].mxu0 }
 0x37d   :  { %327 = vst [vmem:[%s2208_s4 + $0x28] sm:$0xff] %v1599_v3  ;;  %v263_v4 = vpop.f32.mrb[5].mxu0 }
 0x37e   :  { %326 = vst [vmem:[%s2208_s4 + $0x20] sm:$0xff] %v263_v4 }
 0x380   :  { %v1602_v5 = vpop.f32.mrb[6].mxu0 }
 0x381   :  { %329 = vst [vmem:[%s2208_s4 + $0x38] sm:$0xff] %v1602_v5  ;;  %v273_v6 = vpop.f32.mrb[7].mxu0 }
 0x382   :  { %328 = vst [vmem:[%s2208_s4 + $0x30] sm:$0xff] %v273_v6 }
 0x384   :  { %v1605_v7 = vpop.f32.mrb[8].mxu0 }
 0x385   :  { %331 = vst [vmem:[%s2208_s4 + $0x48] sm:$0xff] %v1605_v7  ;;  %v283_v8 = vpop.f32.mrb[9].mxu0 }
 0x386   :  { %330 = vst [vmem:[%s2208_s4 + $0x40] sm:$0xff] %v283_v8 }
 0x388   :  { %v1608_v9 = vpop.f32.mrb[10].mxu0 }
 0x389   :  { %333 = vst [vmem:[%s2208_s4 + $0x58] sm:$0xff] %v1608_v9  ;;  %v293_v10 = vpop.f32.mrb[11].mxu0 }
 0x38a   :  { %332 = vst [vmem:[%s2208_s4 + $0x50] sm:$0xff] %v293_v10 }
 0x38c   :  { %v1611_v11 = vpop.f32.mrb[12].mxu0 }
 0x38d   :  { %335 = vst [vmem:[%s2208_s4 + $0x68] sm:$0xff] %v1611_v11  ;;  %v303_v12 = vpop.f32.mrb[13].mxu0 }
 0x38e   :  { %334 = vst [vmem:[%s2208_s4 + $0x60] sm:$0xff] %v303_v12 }
 0x390   :  { %v1614_v13 = vpop.f32.mrb[14].mxu0 }
 0x391   :  { %337 = vst [vmem:[%s2208_s4 + $0x78] sm:$0xff] %v1614_v13  ;;  %v313_v14 = vpop.f32.mrb[15].mxu0 }
 0x392   :  { %336 = vst [vmem:[%s2208_s4 + $0x70] sm:$0xff] %v313_v14 }
 0x3bc   :  { %v1677_v15 = vpop.f32.mrb[16].mxu1 }
 0x3bd   :  { %1407 = vst [vmem:[%s2208_s4 + $0x88] sm:$0xff] %v1677_v15  ;;  %v877_v16 = vpop.f32.mrb[17].mxu1 }
 0x3be   :  { %1406 = vst [vmem:[%s2208_s4 + $0x80] sm:$0xff] %v877_v16 }
 0x3c4   :  { %v1680_v17 = vpop.f32.mrb[18].mxu1 }
 0x3c5   :  { %1409 = vst [vmem:[%s2208_s4 + $0x98] sm:$0xff] %v1680_v17  ;;  %v887_v18 = vpop.f32.mrb[19].mxu1 }
 0x3c6   :  { %1408 = vst [vmem:[%s2208_s4 + $0x90] sm:$0xff] %v887_v18 }
 0x3cc   :  { %v1683_v19 = vpop.f32.mrb[20].mxu1 }
 0x3cd   :  { %1411 = vst [vmem:[%s2208_s4 + $0xa8] sm:$0xff] %v1683_v19  ;;  %v897_v20 = vpop.f32.mrb[21].mxu1 }
 0x3ce   :  { %1410 = vst [vmem:[%s2208_s4 + $0xa0] sm:$0xff] %v897_v20 }
 0x3d4   :  { %v1686_v0 = vpop.f32.mrb[22].mxu1 }
 0x3d5   :  { %1413 = vst [vmem:[%s2208_s4 + $0xb8] sm:$0xff] %v1686_v0  ;;  %v907_v21 = vpop.f32.mrb[23].mxu1 }
 0x3d6   :  { %1412 = vst [vmem:[%s2208_s4 + $0xb0] sm:$0xff] %v907_v21 }
 0x3dc   :  { %v1689_v22 = vpop.f32.mrb[24].mxu1 }
 0x3dd   :  { %1415 = vst [vmem:[%s2208_s4 + $0xc8] sm:$0xff] %v1689_v22  ;;  %v917_v23 = vpop.f32.mrb[25].mxu1 }
 0x3de   :  { %1414 = vst [vmem:[%s2208_s4 + $0xc0] sm:$0xff] %v917_v23 }
 0x3e4   :  { %v1692_v24 = vpop.f32.mrb[26].mxu1 }
 0x3e5   :  { %1417 = vst [vmem:[%s2208_s4 + $0xd8] sm:$0xff] %v1692_v24  ;;  %v927_v25 = vpop.f32.mrb[27].mxu1 }
 0x3e6   :  { %1416 = vst [vmem:[%s2208_s4 + $0xd0] sm:$0xff] %v927_v25 }
 0x3ec   :  { %v1695_v26 = vpop.f32.mrb[28].mxu1 }
 0x3ed   :  { %v1649_v27 = vpop.f32.mrb[16].mxu0  ;;  %1419 = vst [vmem:[%s2208_s4 + $0xe8] sm:$0xff] %v1695_v26  ;;  %v937_v28 = vpop.f32.mrb[29].mxu1 }
 0x3ee   :  { %677 = vst [vmem:[%s2209_s5 + $0x8] sm:$0xff] %v1649_v27  ;;  %v597_v29 = vpop.f32.mrb[17].mxu0  ;;  %1418 = vst [vmem:[%s2208_s4 + $0xe0] sm:$0xff] %v937_v28 }
 0x3ef   :  { %676 = vst [vmem:[%s2209_s5] sm:$0xff] %v597_v29 }
 0x3f4   :  { %v1698_v30 = vpop.f32.mrb[30].mxu1 }
 0x3f5   :  { %v1652_v31 = vpop.f32.mrb[18].mxu0  ;;  %1421 = vst [vmem:[%s2208_s4 + $0xf8] sm:$0xff] %v1698_v30  ;;  %v947_v32 = vpop.f32.mrb[31].mxu1 }
 0x3f6   :  { %679 = vst [vmem:[%s2209_s5 + $0x18] sm:$0xff] %v1652_v31  ;;  %v607_v33 = vpop.f32.mrb[19].mxu0  ;;  %1420 = vst [vmem:[%s2208_s4 + $0xf0] sm:$0xff] %v947_v32 }
 0x3f7   :  { %678 = vst [vmem:[%s2209_s5 + $0x10] sm:$0xff] %v607_v33 }
 0x3fd   :  { %v1655_v34 = vpop.f32.mrb[20].mxu0 }
 0x3fe   :  { %681 = vst [vmem:[%s2209_s5 + $0x28] sm:$0xff] %v1655_v34  ;;  %v617_v35 = vpop.f32.mrb[21].mxu0 }
 0x3ff   :  { %680 = vst [vmem:[%s2209_s5 + $0x20] sm:$0xff] %v617_v35 }
 0x405   :  { %v1658_v36 = vpop.f32.mrb[22].mxu0 }
 0x406   :  { %683 = vst [vmem:[%s2209_s5 + $0x38] sm:$0xff] %v1658_v36  ;;  %v627_v37 = vpop.f32.mrb[23].mxu0 }
 0x407   :  { %682 = vst [vmem:[%s2209_s5 + $0x30] sm:$0xff] %v627_v37 }
 0x40d   :  { %v1661_v38 = vpop.f32.mrb[24].mxu0 }
 0x40e   :  { %685 = vst [vmem:[%s2209_s5 + $0x48] sm:$0xff] %v1661_v38  ;;  %v637_v39 = vpop.f32.mrb[25].mxu0 }
 0x40f   :  { %684 = vst [vmem:[%s2209_s5 + $0x40] sm:$0xff] %v637_v39 }
 0x415   :  { %v1664_v40 = vpop.f32.mrb[26].mxu0 }
 0x416   :  { %687 = vst [vmem:[%s2209_s5 + $0x58] sm:$0xff] %v1664_v40  ;;  %v647_v41 = vpop.f32.mrb[27].mxu0 }
 0x417   :  { %686 = vst [vmem:[%s2209_s5 + $0x50] sm:$0xff] %v647_v41 }
 0x41d   :  { %v1667_v42 = vpop.f32.mrb[28].mxu0 }
 0x41e   :  { %689 = vst [vmem:[%s2209_s5 + $0x68] sm:$0xff] %v1667_v42  ;;  %v657_v43 = vpop.f32.mrb[29].mxu0 }
 0x41f   :  { %688 = vst [vmem:[%s2209_s5 + $0x60] sm:$0xff] %v657_v43 }
 0x425   :  { %v1670_v44 = vpop.f32.mrb[30].mxu0 }
 0x426   :  { %691 = vst [vmem:[%s2209_s5 + $0x78] sm:$0xff] %v1670_v44  ;;  %v667_v45 = vpop.f32.mrb[31].mxu0 }
 0x427   :  { %690 = vst [vmem:[%s2209_s5 + $0x70] sm:$0xff] %v667_v45 }
 0x429   :  { %v1705_v46 = vpop.f32.mrb[32].mxu0 }
 0x42a   :  { %v1039_v47 = vpop.f32.mrb[33].mxu0 }
 0x42b   :  { %1731 = vmatprep.mubr.msk.f32.mxu1 %vm128_vm1, %v1039_v47 }
 0x42c   :  { %1732 = vmatmul.mubr.msk.f32.vlgmr.msra.gmra.mrb[32].mxu1 %vm128_vm1, %v1705_v46 }
 0x42d   :  { %v1708_v48 = vpop.f32.mrb[34].mxu0 }
 0x42e   :  { %v1049_v49 = vpop.f32.mrb[35].mxu0 }
 0x42f   :  { %1734 = vmatprep.mubr.msk.f32.mxu1 %vm128_vm1, %v1049_v49 }
 0x430   :  { %1735 = vmatmul.mubr.msk.f32.gmra.mrb[34].mxu1 %vm128_vm1, %v1708_v48 }
 0x431   :  { %v1711_v50 = vpop.f32.mrb[36].mxu0 }
 0x432   :  { %v1059_v51 = vpop.f32.mrb[37].mxu0 }
 0x433   :  { %1737 = vmatprep.mubr.msk.f32.mxu1 %vm128_vm1, %v1059_v51 }
 0x434   :  { %1738 = vmatmul.mubr.msk.f32.gmra.mrb[36].mxu1 %vm128_vm1, %v1711_v50 }
 0x435   :  { %v1714_v52 = vpop.f32.mrb[38].mxu0 }
 0x436   :  { %v1069_v53 = vpop.f32.mrb[39].mxu0 }
 0x437   :  { %1740 = vmatprep.mubr.msk.f32.mxu1 %vm128_vm1, %v1069_v53 }
 0x438   :  { %1741 = vmatmul.mubr.msk.f32.gmra.mrb[38].mxu1 %vm128_vm1, %v1714_v52 }
 0x439   :  { %v1717_v54 = vpop.f32.mrb[40].mxu0 }
 0x43a   :  { %v1079_v55 = vpop.f32.mrb[41].mxu0 }
 0x43b   :  { %1743 = vmatprep.mubr.msk.f32.mxu1 %vm128_vm1, %v1079_v55 }
 0x43c   :  { %1744 = vmatmul.mubr.msk.f32.gmra.mrb[40].mxu1 %vm128_vm1, %v1717_v54 }
 0x43d   :  { %v1720_v56 = vpop.f32.mrb[42].mxu0 }
 0x43e   :  { %v1089_v57 = vpop.f32.mrb[43].mxu0 }
 0x43f   :  { %1746 = vmatprep.mubr.msk.f32.mxu1 %vm128_vm1, %v1089_v57 }
 0x440   :  { %1747 = vmatmul.mubr.msk.f32.gmra.mrb[42].mxu1 %vm128_vm1, %v1720_v56 }
 0x441   :  { %v1723_v58 = vpop.f32.mrb[44].mxu0 }
 0x442   :  { %v1099_v59 = vpop.f32.mrb[45].mxu0 }
 0x443   :  { %1749 = vmatprep.mubr.msk.f32.mxu1 %vm128_vm1, %v1099_v59 }
 0x444   :  { %1750 = vmatmul.mubr.msk.f32.gmra.mrb[44].mxu1 %vm128_vm1, %v1723_v58 }
 0x445   :  { %v1726_v60 = vpop.f32.mrb[46].mxu0 }
 0x446   :  { %v1109_v61 = vpop.f32.mrb[47].mxu0 }
 0x447   :  { %1752 = vmatprep.mubr.msk.f32.mxu1 %vm128_vm1, %v1109_v61 }
 0x448   :  { %1753 = vmatmul.mubr.msk.f32.gmra.mrb[46].mxu1 %vm128_vm1, %v1726_v60 }
 0x4ff   :  { %v1733_v62 = vpop.f32.mrb[32].mxu1 }
 0x500   :  { %1455 = vst [vmem:[%s2209_s5 + $0x88] sm:$0xff] %v1733_v62  ;;  %v1232_v63 = vpop.f32.mrb[33].mxu1 }
 0x501   :  { %1454 = vst [vmem:[%s2209_s5 + $0x80] sm:$0xff] %v1232_v63 }
 0x503   :  { %v1736_v1 = vpop.f32.mrb[34].mxu1 }
 0x504   :  { %1457 = vst [vmem:[%s2209_s5 + $0x98] sm:$0xff] %v1736_v1  ;;  %v1242_v2 = vpop.f32.mrb[35].mxu1 }
 0x505   :  { %1456 = vst [vmem:[%s2209_s5 + $0x90] sm:$0xff] %v1242_v2 }
 0x507   :  { %v1739_v3 = vpop.f32.mrb[36].mxu1 }
 0x508   :  { %1459 = vst [vmem:[%s2209_s5 + $0xa8] sm:$0xff] %v1739_v3  ;;  %v1252_v4 = vpop.f32.mrb[37].mxu1 }
 0x509   :  { %1458 = vst [vmem:[%s2209_s5 + $0xa0] sm:$0xff] %v1252_v4 }
 0x50b   :  { %v1742_v5 = vpop.f32.mrb[38].mxu1 }
 0x50c   :  { %1461 = vst [vmem:[%s2209_s5 + $0xb8] sm:$0xff] %v1742_v5  ;;  %v1262_v6 = vpop.f32.mrb[39].mxu1 }
 0x50d   :  { %1460 = vst [vmem:[%s2209_s5 + $0xb0] sm:$0xff] %v1262_v6 }
 0x50f   :  { %v1745_v7 = vpop.f32.mrb[40].mxu1 }
 0x510   :  { %1463 = vst [vmem:[%s2209_s5 + $0xc8] sm:$0xff] %v1745_v7  ;;  %v1272_v8 = vpop.f32.mrb[41].mxu1 }
 0x511   :  { %1462 = vst [vmem:[%s2209_s5 + $0xc0] sm:$0xff] %v1272_v8 }
 0x513   :  { %v1748_v9 = vpop.f32.mrb[42].mxu1 }
 0x514   :  { %1465 = vst [vmem:[%s2209_s5 + $0xd8] sm:$0xff] %v1748_v9  ;;  %v1282_v10 = vpop.f32.mrb[43].mxu1 }
 0x515   :  { %1464 = vst [vmem:[%s2209_s5 + $0xd0] sm:$0xff] %v1282_v10 }
 0x517   :  { %v1751_v11 = vpop.f32.mrb[44].mxu1 }
 0x518   :  { %1467 = vst [vmem:[%s2209_s5 + $0xe8] sm:$0xff] %v1751_v11  ;;  %v1292_v12 = vpop.f32.mrb[45].mxu1 }
 0x519   :  { %1466 = vst [vmem:[%s2209_s5 + $0xe0] sm:$0xff] %v1292_v12 }
 0x51b   :  { %v1754_v13 = vpop.f32.mrb[46].mxu1 }
 0x51c   :  { %1469 = vst [vmem:[%s2209_s5 + $0xf8] sm:$0xff] %v1754_v13  ;;  %v1302_v14 = vpop.f32.mrb[47].mxu1 }
 0x51d   :  { %1468 = vst [vmem:[%s2209_s5 + $0xf0] sm:$0xff] %v1302_v14 }

</bundles_post_ra>
